<compile_context>
chip_gen: v7x
topology: tpu7x:2x2x1
jax: 0.10.0
libtpu: 0.0.40
codegen_flags: <defaults>
</compile_context>

<pallas_src>
import jax
import jax.numpy as jnp
from jax import lax
from jax.experimental import pallas as pl
from jax.experimental.pallas import tpu as pltpu


_NEG = -1e30  # effectively -inf for padded vocab lanes (avoids inf-inf NaNs)


def _rup(x, m):
    return ((x + m - 1) // m) * m


def seq2seq_kernel(x_enc_ref, tok0_ref,
                   enc_wih_ref, enc_whh_ref, enc_b_ref,
                   w_dec_tok_ref, w_dec_hh_ref, dec_b_ref,
                   w_out_ref, b_out_ref,
                   out_ref):
    SB, _ = x_enc_ref.shape                 # (S*Bp, Ep), pre-flattened in wrapper
    S, B, V = out_ref.shape                 # (S, Bp, Vp)
    H = enc_whh_ref.shape[0]

    # Hoist all weight reads out of the loops (read each exactly once).
    enc_whh = enc_whh_ref[...]
    w_dec_tok = w_dec_tok_ref[...]
    w_dec_hh = w_dec_hh_ref[...]
    w_out = w_out_ref[...]

    # Hoisted bias broadcasts (JAX does not CSE broadcast_in_dim).
    enc_b_b = jnp.broadcast_to(enc_b_ref[...], (SB, H))
    dec_b_b = jnp.broadcast_to(dec_b_ref[...], (B, H))
    b_out_b = jnp.broadcast_to(b_out_ref[...], (B, V))

    # ---- Encoder input projection hoisted out of the serial loop:
    # one well-shaped (S*B, E) @ (E, H) matmul + bias instead of 2 matmuls/step.
    x_ih = jnp.dot(x_enc_ref[...], enc_wih_ref[...],
                   preferred_element_type=jnp.float32) + enc_b_b

    # ---- Encoder recurrence: fully unrolled, 1 MXU op per step.
    # Static, sublane-aligned 8-row slice per step (no in-kernel reshape).
    h = jnp.zeros((B, H), jnp.float32)
    for t in range(S):
        x_t = x_ih[t * B:(t + 1) * B, :]
        h = jnp.tanh(x_t + jnp.dot(h, enc_whh,
                                   preferred_element_type=jnp.float32))

    # ---- Greedy decoder: fully unrolled.  Per step: two input matmuls
    # (token one-hot and hidden, no concat), one output matmul.
    ids = lax.broadcasted_iota(jnp.int32, (B, V), 1)   # hoisted out of the loop
    tok = tok0_ref[...]                                # (B, Vp) one-hot of source[:, 0]
    for s in range(S):
        h = jnp.tanh(
            jnp.dot(tok, w_dec_tok, preferred_element_type=jnp.float32)
            + jnp.dot(h, w_dec_hh, preferred_element_type=jnp.float32)
            + dec_b_b)
        logits = jnp.dot(h, w_out, preferred_element_type=jnp.float32) + b_out_b

        # log-softmax over vocab lanes (padded lanes carry -1e30 bias -> exp == 0)
        m = jnp.max(logits, axis=1, keepdims=True)
        z = logits - m
        lse = jnp.log(jnp.sum(jnp.exp(z), axis=1, keepdims=True))
        out_ref[s] = z - lse                            # dense (8,128) store

        # argmax (first-max tie-break, matching torch/jnp.argmax) as a one-hot
        # row feeding the next step's token matmul.
        masked = jnp.where(logits == m, ids, V)
        amax = jnp.min(masked, axis=1, keepdims=True)
        tok = (ids == amax).astype(jnp.float32)


def seq2seq_forward(source, params):
    """source: int32 (batch, seq_len). Returns float32 (batch, seq_len, output_size)."""
    B, S = source.shape
    V, E = params["enc_emb"].shape
    H = params["enc_whh"].shape[0]

    # Pad to TPU-native tiles: batch -> 8 sublanes, feature dims -> 128 lanes.
    Bp, Ep, Hp, Vp = _rup(B, 8), _rup(E, 128), _rup(H, 128), _rup(V, 128)

    def pad2(a, r, c, fill=0.0):
        return jnp.pad(a, ((0, r - a.shape[0]), (0, c - a.shape[1])),
                       constant_values=fill)

    # Encoder input: embed in the wrapper (no (S,B,V) one-hot), time-major,
    # padded, and pre-flattened to (S*Bp, Ep) so the kernel does no reshape.
    x_enc = params["enc_emb"][source]                    # (B, S, E)
    x_enc = jnp.transpose(x_enc, (1, 0, 2))              # (S, B, E)
    x_enc = jnp.pad(x_enc, ((0, 0), (0, Bp - B), (0, Ep - E)))
    x_enc = x_enc.reshape(S * Bp, Ep)

    # First decoder input token = source[:, 0], as a one-hot row block.
    tok0 = jax.nn.one_hot(source[:, 0], Vp, dtype=jnp.float32)   # (B, Vp)
    tok0 = jnp.pad(tok0, ((0, Bp - B), (0, 0)))

    enc_wih = pad2(params["enc_wih"], Ep, Hp)
    enc_whh = pad2(params["enc_whh"], Hp, Hp)
    enc_b = pad2(params["enc_b"], 1, Hp)

    # Fold the decoder embedding into its input projection; keep the token and
    # hidden halves as SEPARATE operands (no per-step concat in the kernel).
    w_dec_tok = pad2(params["dec_emb"] @ params["dec_wih"], Vp, Hp)
    w_dec_hh = pad2(params["dec_whh"], Hp, Hp)
    dec_b = pad2(params["dec_b"], 1, Hp)

    w_out = pad2(params["w_out"], Hp, Vp)
    b_out = pad2(params["b_out"], 1, Vp, fill=_NEG)      # mask padded vocab lanes

    vmem = pl.BlockSpec(memory_space=pltpu.MemorySpace.VMEM)
    out_p = pl.pallas_call(
        seq2seq_kernel,
        out_shape=jax.ShapeDtypeStruct((S, Bp, Vp), jnp.float32),
        in_specs=[vmem] * 10,
        out_specs=vmem,
    )(x_enc, tok0, enc_wih, enc_whh, enc_b,
      w_dec_tok, w_dec_hh, dec_b, w_out, b_out)

    # Un-pad and return PyTorch layout (batch, seq_len, output_size).
    # (At realistic V this transpose should be fused into the consumer.)
    return jnp.transpose(out_p[:, :B, :V], (1, 0, 2))


def seq2seq_ref(source, p):
    """Pure-JAX reference mirroring the PyTorch Seq2Seq.forward semantics."""
    B, S = source.shape
    H = p["enc_whh"].shape[0]
    h = jnp.zeros((B, H), jnp.float32)
    for t in range(S):
        x = p["enc_emb"][source[:, t]]
        h = jnp.tanh(x @ p["enc_wih"] + h @ p["enc_whh"] + p["enc_b"])
    outs = []
    tok = source[:, 0]
    for _ in range(S):
        x = p["dec_emb"][tok]
        h = jnp.tanh(x @ p["dec_wih"] + h @ p["dec_whh"] + p["dec_b"])
        logits = h @ p["w_out"] + p["b_out"]
        logp = jax.nn.log_softmax(logits, axis=1)
        outs.append(logp)
        tok = jnp.argmax(logp, axis=1)
    return jnp.stack(outs, axis=1)


def init_params(key, vocab, emb, hidden):
    ks = jax.random.split(key, 8)
    s = 0.1
    return {
        "enc_emb": s * jax.random.normal(ks[0], (vocab, emb), jnp.float32),
        "enc_wih": s * jax.random.normal(ks[1], (emb, hidden), jnp.float32),
        "enc_whh": s * jax.random.normal(ks[2], (hidden, hidden), jnp.float32),
        "enc_b": jnp.zeros((1, hidden), jnp.float32),
        "dec_emb": s * jax.random.normal(ks[3], (vocab, emb), jnp.float32),
        "dec_wih": s * jax.random.normal(ks[4], (emb, hidden), jnp.float32),
        "dec_whh": s * jax.random.normal(ks[5], (hidden, hidden), jnp.float32),
        "dec_b": jnp.zeros((1, hidden), jnp.float32),
        "w_out": s * jax.random.normal(ks[6], (hidden, vocab), jnp.float32),
        "b_out": jnp.zeros((1, vocab), jnp.float32),
    }


if __name__ == "__main__":
    key = jax.random.PRNGKey(0)
    batch, seq_len, vocab, emb, hidden = 2, 8, 32, 16, 32

    kp, kd = jax.random.split(key)
    params = init_params(kp, vocab, emb, hidden)
    source = jax.random.randint(kd, (batch, seq_len), 0, vocab, dtype=jnp.int32)

    out = seq2seq_forward(source, params)
    out = jax.block_until_ready(out)

    ref = seq2seq_ref(source, params)
    assert out.shape == (batch, seq_len, vocab), out.shape
    assert jnp.allclose(out, ref, atol=1e-5, rtol=1e-5), float(jnp.max(jnp.abs(out - ref)))

    print("KERNEL_OK")
</pallas_src>

<mosaic_0001>
module attributes {stable_mosaic.version = 11 : i64} {
  func.func @seq2seq_kernel(%arg0: memref<64x128xf32, #tpu.memory_space<vmem>>, %arg1: memref<8x128xf32, #tpu.memory_space<vmem>>, %arg2: memref<128x128xf32, #tpu.memory_space<vmem>>, %arg3: memref<128x128xf32, #tpu.memory_space<vmem>>, %arg4: memref<1x128xf32, #tpu.memory_space<vmem>>, %arg5: memref<128x128xf32, #tpu.memory_space<vmem>>, %arg6: memref<128x128xf32, #tpu.memory_space<vmem>>, %arg7: memref<1x128xf32, #tpu.memory_space<vmem>>, %arg8: memref<128x128xf32, #tpu.memory_space<vmem>>, %arg9: memref<1x128xf32, #tpu.memory_space<vmem>>, %arg10: memref<8x8x128xf32, #tpu.memory_space<vmem>>) attributes {dimension_semantics = [], scalar_prefetch = 0 : i64, scratch_operands = 0 : i64, tpu.core_type = #tpu.core_type<tc>} {
    %c0 = arith.constant 0 : index
    %c0_0 = arith.constant 0 : index
    %0 = vector.load %arg3[%c0, %c0_0] : memref<128x128xf32, #tpu.memory_space<vmem>>, vector<128x128xf32>
    %c0_1 = arith.constant 0 : index
    %c0_2 = arith.constant 0 : index
    %1 = vector.load %arg5[%c0_1, %c0_2] : memref<128x128xf32, #tpu.memory_space<vmem>>, vector<128x128xf32>
    %c0_3 = arith.constant 0 : index
    %c0_4 = arith.constant 0 : index
    %2 = vector.load %arg6[%c0_3, %c0_4] : memref<128x128xf32, #tpu.memory_space<vmem>>, vector<128x128xf32>
    %c0_5 = arith.constant 0 : index
    %c0_6 = arith.constant 0 : index
    %3 = vector.load %arg8[%c0_5, %c0_6] : memref<128x128xf32, #tpu.memory_space<vmem>>, vector<128x128xf32>
    %c0_7 = arith.constant 0 : index
    %c0_8 = arith.constant 0 : index
    %4 = vector.load %arg4[%c0_7, %c0_8] : memref<1x128xf32, #tpu.memory_space<vmem>>, vector<1x128xf32>
    %5 = vector.shape_cast %4 : vector<1x128xf32> to vector<1x128xf32>
    %6 = vector.broadcast %5 : vector<1x128xf32> to vector<64x128xf32>
    %c0_9 = arith.constant 0 : index
    %c0_10 = arith.constant 0 : index
    %7 = vector.load %arg7[%c0_9, %c0_10] : memref<1x128xf32, #tpu.memory_space<vmem>>, vector<1x128xf32>
    %8 = vector.shape_cast %7 : vector<1x128xf32> to vector<1x128xf32>
    %9 = vector.broadcast %8 : vector<1x128xf32> to vector<8x128xf32>
    %c0_11 = arith.constant 0 : index
    %c0_12 = arith.constant 0 : index
    %10 = vector.load %arg9[%c0_11, %c0_12] : memref<1x128xf32, #tpu.memory_space<vmem>>, vector<1x128xf32>
    %11 = vector.shape_cast %10 : vector<1x128xf32> to vector<1x128xf32>
    %12 = vector.broadcast %11 : vector<1x128xf32> to vector<8x128xf32>
    %c0_13 = arith.constant 0 : index
    %c0_14 = arith.constant 0 : index
    %13 = vector.load %arg0[%c0_13, %c0_14] : memref<64x128xf32, #tpu.memory_space<vmem>>, vector<64x128xf32>
    %c0_15 = arith.constant 0 : index
    %c0_16 = arith.constant 0 : index
    %14 = vector.load %arg2[%c0_15, %c0_16] : memref<128x128xf32, #tpu.memory_space<vmem>>, vector<128x128xf32>
    %cst = arith.constant dense<0.000000e+00> : vector<64x128xf32>
    %15 = tpu.matmul %13, %14, %cst {dimension_numbers = #tpu.dot_dimension_numbers<[1], [0], [0], [1], [0, 0, 1, 1], [], []>} : vector<64x128xf32>, vector<128x128xf32>, vector<64x128xf32> -> vector<64x128xf32>
    %16 = arith.addf %15, %6 : vector<64x128xf32>
    %cst_17 = arith.constant 0.000000e+00 : f32
    %17 = vector.broadcast %cst_17 : f32 to vector<8x128xf32>
    %18 = vector.extract_strided_slice %16 {offsets = [0, 0], sizes = [8, 128], strides = [1, 1]} : vector<64x128xf32> to vector<8x128xf32>
    %cst_18 = arith.constant dense<0.000000e+00> : vector<8x128xf32>
    %19 = tpu.matmul %17, %0, %cst_18 {dimension_numbers = #tpu.dot_dimension_numbers<[1], [0], [0], [1], [0, 0, 1, 1], [], []>} : vector<8x128xf32>, vector<128x128xf32>, vector<8x128xf32> -> vector<8x128xf32>
    %20 = arith.addf %18, %19 : vector<8x128xf32>
    %21 = math.tanh %20 : vector<8x128xf32>
    %22 = vector.extract_strided_slice %16 {offsets = [8, 0], sizes = [8, 128], strides = [1, 1]} : vector<64x128xf32> to vector<8x128xf32>
    %cst_19 = arith.constant dense<0.000000e+00> : vector<8x128xf32>
    %23 = tpu.matmul %21, %0, %cst_19 {dimension_numbers = #tpu.dot_dimension_numbers<[1], [0], [0], [1], [0, 0, 1, 1], [], []>} : vector<8x128xf32>, vector<128x128xf32>, vector<8x128xf32> -> vector<8x128xf32>
    %24 = arith.addf %22, %23 : vector<8x128xf32>
    %25 = math.tanh %24 : vector<8x128xf32>
    %26 = vector.extract_strided_slice %16 {offsets = [16, 0], sizes = [8, 128], strides = [1, 1]} : vector<64x128xf32> to vector<8x128xf32>
    %cst_20 = arith.constant dense<0.000000e+00> : vector<8x128xf32>
    %27 = tpu.matmul %25, %0, %cst_20 {dimension_numbers = #tpu.dot_dimension_numbers<[1], [0], [0], [1], [0, 0, 1, 1], [], []>} : vector<8x128xf32>, vector<128x128xf32>, vector<8x128xf32> -> vector<8x128xf32>
    %28 = arith.addf %26, %27 : vector<8x128xf32>
    %29 = math.tanh %28 : vector<8x128xf32>
    %30 = vector.extract_strided_slice %16 {offsets = [24, 0], sizes = [8, 128], strides = [1, 1]} : vector<64x128xf32> to vector<8x128xf32>
    %cst_21 = arith.constant dense<0.000000e+00> : vector<8x128xf32>
    %31 = tpu.matmul %29, %0, %cst_21 {dimension_numbers = #tpu.dot_dimension_numbers<[1], [0], [0], [1], [0, 0, 1, 1], [], []>} : vector<8x128xf32>, vector<128x128xf32>, vector<8x128xf32> -> vector<8x128xf32>
    %32 = arith.addf %30, %31 : vector<8x128xf32>
    %33 = math.tanh %32 : vector<8x128xf32>
    %34 = vector.extract_strided_slice %16 {offsets = [32, 0], sizes = [8, 128], strides = [1, 1]} : vector<64x128xf32> to vector<8x128xf32>
    %cst_22 = arith.constant dense<0.000000e+00> : vector<8x128xf32>
    %35 = tpu.matmul %33, %0, %cst_22 {dimension_numbers = #tpu.dot_dimension_numbers<[1], [0], [0], [1], [0, 0, 1, 1], [], []>} : vector<8x128xf32>, vector<128x128xf32>, vector<8x128xf32> -> vector<8x128xf32>
    %36 = arith.addf %34, %35 : vector<8x128xf32>
    %37 = math.tanh %36 : vector<8x128xf32>
    %38 = vector.extract_strided_slice %16 {offsets = [40, 0], sizes = [8, 128], strides = [1, 1]} : vector<64x128xf32> to vector<8x128xf32>
    %cst_23 = arith.constant dense<0.000000e+00> : vector<8x128xf32>
    %39 = tpu.matmul %37, %0, %cst_23 {dimension_numbers = #tpu.dot_dimension_numbers<[1], [0], [0], [1], [0, 0, 1, 1], [], []>} : vector<8x128xf32>, vector<128x128xf32>, vector<8x128xf32> -> vector<8x128xf32>
    %40 = arith.addf %38, %39 : vector<8x128xf32>
    %41 = math.tanh %40 : vector<8x128xf32>
    %42 = vector.extract_strided_slice %16 {offsets = [48, 0], sizes = [8, 128], strides = [1, 1]} : vector<64x128xf32> to vector<8x128xf32>
    %cst_24 = arith.constant dense<0.000000e+00> : vector<8x128xf32>
    %43 = tpu.matmul %41, %0, %cst_24 {dimension_numbers = #tpu.dot_dimension_numbers<[1], [0], [0], [1], [0, 0, 1, 1], [], []>} : vector<8x128xf32>, vector<128x128xf32>, vector<8x128xf32> -> vector<8x128xf32>
    %44 = arith.addf %42, %43 : vector<8x128xf32>
    %45 = math.tanh %44 : vector<8x128xf32>
    %46 = vector.extract_strided_slice %16 {offsets = [56, 0], sizes = [8, 128], strides = [1, 1]} : vector<64x128xf32> to vector<8x128xf32>
    %cst_25 = arith.constant dense<0.000000e+00> : vector<8x128xf32>
    %47 = tpu.matmul %45, %0, %cst_25 {dimension_numbers = #tpu.dot_dimension_numbers<[1], [0], [0], [1], [0, 0, 1, 1], [], []>} : vector<8x128xf32>, vector<128x128xf32>, vector<8x128xf32> -> vector<8x128xf32>
    %48 = arith.addf %46, %47 : vector<8x128xf32>
    %49 = math.tanh %48 : vector<8x128xf32>
    %50 = tpu.iota {dimensions = array<i32: 1>} : vector<8x128xi32>
    %c0_26 = arith.constant 0 : index
    %c0_27 = arith.constant 0 : index
    %51 = vector.load %arg1[%c0_26, %c0_27] : memref<8x128xf32, #tpu.memory_space<vmem>>, vector<8x128xf32>
    %cst_28 = arith.constant dense<0.000000e+00> : vector<8x128xf32>
    %52 = tpu.matmul %51, %1, %cst_28 {dimension_numbers = #tpu.dot_dimension_numbers<[1], [0], [0], [1], [0, 0, 1, 1], [], []>} : vector<8x128xf32>, vector<128x128xf32>, vector<8x128xf32> -> vector<8x128xf32>
    %cst_29 = arith.constant dense<0.000000e+00> : vector<8x128xf32>
    %53 = tpu.matmul %49, %2, %cst_29 {dimension_numbers = #tpu.dot_dimension_numbers<[1], [0], [0], [1], [0, 0, 1, 1], [], []>} : vector<8x128xf32>, vector<128x128xf32>, vector<8x128xf32> -> vector<8x128xf32>
    %54 = arith.addf %52, %53 : vector<8x128xf32>
    %55 = arith.addf %54, %9 : vector<8x128xf32>
    %56 = math.tanh %55 : vector<8x128xf32>
    %cst_30 = arith.constant dense<0.000000e+00> : vector<8x128xf32>
    %57 = tpu.matmul %56, %3, %cst_30 {dimension_numbers = #tpu.dot_dimension_numbers<[1], [0], [0], [1], [0, 0, 1, 1], [], []>} : vector<8x128xf32>, vector<128x128xf32>, vector<8x128xf32> -> vector<8x128xf32>
    %58 = arith.addf %57, %12 : vector<8x128xf32>
    %cst_31 = arith.constant dense<0xFF800000> : vector<8xf32>
    %59 = vector.multi_reduction <maximumf>, %58, %cst_31 [1] : vector<8x128xf32> to vector<8xf32>
    %60 = vector.shape_cast %59 : vector<8xf32> to vector<8x1xf32>
    %61 = vector.broadcast %60 : vector<8x1xf32> to vector<8x128xf32>
    %62 = arith.subf %58, %61 : vector<8x128xf32>
    %63 = math.exp %62 : vector<8x128xf32>
    %cst_32 = arith.constant dense<0.000000e+00> : vector<8xf32>
    %64 = vector.multi_reduction <add>, %63, %cst_32 [1] : vector<8x128xf32> to vector<8xf32>
    %65 = vector.shape_cast %64 : vector<8xf32> to vector<8x1xf32>
    %66 = math.log %65 : vector<8x1xf32>
    %67 = vector.broadcast %66 : vector<8x1xf32> to vector<8x128xf32>
    %68 = arith.subf %62, %67 : vector<8x128xf32>
    %c0_33 = arith.constant 0 : index
    %c0_34 = arith.constant 0 : index
    %c0_35 = arith.constant 0 : index
    %69 = vector.load %arg10[%c0_33, %c0_34, %c0_35] : memref<8x8x128xf32, #tpu.memory_space<vmem>>, vector<1x8x128xf32>
    %70 = vector.shape_cast %69 : vector<1x8x128xf32> to vector<8x128xf32>
    %71 = vector.shape_cast %68 : vector<8x128xf32> to vector<1x8x128xf32>
    tpu.vector_store %arg10[%c0_33, %c0_34, %c0_35], %71 {strides = array<i32>} : memref<8x8x128xf32, #tpu.memory_space<vmem>>, vector<1x8x128xf32>,
    %72 = vector.broadcast %60 : vector<8x1xf32> to vector<8x128xf32>
    %73 = arith.cmpf oeq, %58, %72 : vector<8x128xf32>
    %c128_i32 = arith.constant 128 : i32
    %74 = vector.broadcast %c128_i32 : i32 to vector<8x128xi32>
    %75 = arith.select %73, %50, %74 : vector<8x128xi1>, vector<8x128xi32>
    %cst_36 = arith.constant dense<2147483647> : vector<8xi32>
    %76 = vector.multi_reduction <minsi>, %75, %cst_36 [1] : vector<8x128xi32> to vector<8xi32>
    %77 = vector.shape_cast %76 : vector<8xi32> to vector<8x1xi32>
    %78 = vector.broadcast %77 : vector<8x1xi32> to vector<8x128xi32>
    %79 = arith.cmpi eq, %50, %78 : vector<8x128xi32>
    %80 = arith.extui %79 : vector<8x128xi1> to vector<8x128xi32>
    %81 = arith.sitofp %80 : vector<8x128xi32> to vector<8x128xf32>
    %cst_37 = arith.constant dense<0.000000e+00> : vector<8x128xf32>
    %82 = tpu.matmul %81, %1, %cst_37 {dimension_numbers = #tpu.dot_dimension_numbers<[1], [0], [0], [1], [0, 0, 1, 1], [], []>} : vector<8x128xf32>, vector<128x128xf32>, vector<8x128xf32> -> vector<8x128xf32>
    %cst_38 = arith.constant dense<0.000000e+00> : vector<8x128xf32>
    %83 = tpu.matmul %56, %2, %cst_38 {dimension_numbers = #tpu.dot_dimension_numbers<[1], [0], [0], [1], [0, 0, 1, 1], [], []>} : vector<8x128xf32>, vector<128x128xf32>, vector<8x128xf32> -> vector<8x128xf32>
    %84 = arith.addf %82, %83 : vector<8x128xf32>
    %85 = arith.addf %84, %9 : vector<8x128xf32>
    %86 = math.tanh %85 : vector<8x128xf32>
    %cst_39 = arith.constant dense<0.000000e+00> : vector<8x128xf32>
    %87 = tpu.matmul %86, %3, %cst_39 {dimension_numbers = #tpu.dot_dimension_numbers<[1], [0], [0], [1], [0, 0, 1, 1], [], []>} : vector<8x128xf32>, vector<128x128xf32>, vector<8x128xf32> -> vector<8x128xf32>
    %88 = arith.addf %87, %12 : vector<8x128xf32>
    %cst_40 = arith.constant dense<0xFF800000> : vector<8xf32>
    %89 = vector.multi_reduction <maximumf>, %88, %cst_40 [1] : vector<8x128xf32> to vector<8xf32>
    %90 = vector.shape_cast %89 : vector<8xf32> to vector<8x1xf32>
    %91 = vector.broadcast %90 : vector<8x1xf32> to vector<8x128xf32>
    %92 = arith.subf %88, %91 : vector<8x128xf32>
    %93 = math.exp %92 : vector<8x128xf32>
    %cst_41 = arith.constant dense<0.000000e+00> : vector<8xf32>
    %94 = vector.multi_reduction <add>, %93, %cst_41 [1] : vector<8x128xf32> to vector<8xf32>
    %95 = vector.shape_cast %94 : vector<8xf32> to vector<8x1xf32>
    %96 = math.log %95 : vector<8x1xf32>
    %97 = vector.broadcast %96 : vector<8x1xf32> to vector<8x128xf32>
    %98 = arith.subf %92, %97 : vector<8x128xf32>
    %c1 = arith.constant 1 : index
    %c0_42 = arith.constant 0 : index
    %c0_43 = arith.constant 0 : index
    %99 = vector.load %arg10[%c1, %c0_42, %c0_43] : memref<8x8x128xf32, #tpu.memory_space<vmem>>, vector<1x8x128xf32>
    %100 = vector.shape_cast %99 : vector<1x8x128xf32> to vector<8x128xf32>
    %101 = vector.shape_cast %98 : vector<8x128xf32> to vector<1x8x128xf32>
    tpu.vector_store %arg10[%c1, %c0_42, %c0_43], %101 {strides = array<i32>} : memref<8x8x128xf32, #tpu.memory_space<vmem>>, vector<1x8x128xf32>,
    %102 = vector.broadcast %90 : vector<8x1xf32> to vector<8x128xf32>
    %103 = arith.cmpf oeq, %88, %102 : vector<8x128xf32>
    %c128_i32_44 = arith.constant 128 : i32
    %104 = vector.broadcast %c128_i32_44 : i32 to vector<8x128xi32>
    %105 = arith.select %103, %50, %104 : vector<8x128xi1>, vector<8x128xi32>
    %cst_45 = arith.constant dense<2147483647> : vector<8xi32>
    %106 = vector.multi_reduction <minsi>, %105, %cst_45 [1] : vector<8x128xi32> to vector<8xi32>
    %107 = vector.shape_cast %106 : vector<8xi32> to vector<8x1xi32>
    %108 = vector.broadcast %107 : vector<8x1xi32> to vector<8x128xi32>
    %109 = arith.cmpi eq, %50, %108 : vector<8x128xi32>
    %110 = arith.extui %109 : vector<8x128xi1> to vector<8x128xi32>
    %111 = arith.sitofp %110 : vector<8x128xi32> to vector<8x128xf32>
    %cst_46 = arith.constant dense<0.000000e+00> : vector<8x128xf32>
    %112 = tpu.matmul %111, %1, %cst_46 {dimension_numbers = #tpu.dot_dimension_numbers<[1], [0], [0], [1], [0, 0, 1, 1], [], []>} : vector<8x128xf32>, vector<128x128xf32>, vector<8x128xf32> -> vector<8x128xf32>
    %cst_47 = arith.constant dense<0.000000e+00> : vector<8x128xf32>
    %113 = tpu.matmul %86, %2, %cst_47 {dimension_numbers = #tpu.dot_dimension_numbers<[1], [0], [0], [1], [0, 0, 1, 1], [], []>} : vector<8x128xf32>, vector<128x128xf32>, vector<8x128xf32> -> vector<8x128xf32>
    %114 = arith.addf %112, %113 : vector<8x128xf32>
    %115 = arith.addf %114, %9 : vector<8x128xf32>
    %116 = math.tanh %115 : vector<8x128xf32>
    %cst_48 = arith.constant dense<0.000000e+00> : vector<8x128xf32>
    %117 = tpu.matmul %116, %3, %cst_48 {dimension_numbers = #tpu.dot_dimension_numbers<[1], [0], [0], [1], [0, 0, 1, 1], [], []>} : vector<8x128xf32>, vector<128x128xf32>, vector<8x128xf32> -> vector<8x128xf32>
    %118 = arith.addf %117, %12 : vector<8x128xf32>
    %cst_49 = arith.constant dense<0xFF800000> : vector<8xf32>
    %119 = vector.multi_reduction <maximumf>, %118, %cst_49 [1] : vector<8x128xf32> to vector<8xf32>
    %120 = vector.shape_cast %119 : vector<8xf32> to vector<8x1xf32>
    %121 = vector.broadcast %120 : vector<8x1xf32> to vector<8x128xf32>
    %122 = arith.subf %118, %121 : vector<8x128xf32>
    %123 = math.exp %122 : vector<8x128xf32>
    %cst_50 = arith.constant dense<0.000000e+00> : vector<8xf32>
    %124 = vector.multi_reduction <add>, %123, %cst_50 [1] : vector<8x128xf32> to vector<8xf32>
    %125 = vector.shape_cast %124 : vector<8xf32> to vector<8x1xf32>
    %126 = math.log %125 : vector<8x1xf32>
    %127 = vector.broadcast %126 : vector<8x1xf32> to vector<8x128xf32>
    %128 = arith.subf %122, %127 : vector<8x128xf32>
    %c2 = arith.constant 2 : index
    %c0_51 = arith.constant 0 : index
    %c0_52 = arith.constant 0 : index
    %129 = vector.load %arg10[%c2, %c0_51, %c0_52] : memref<8x8x128xf32, #tpu.memory_space<vmem>>, vector<1x8x128xf32>
    %130 = vector.shape_cast %129 : vector<1x8x128xf32> to vector<8x128xf32>
    %131 = vector.shape_cast %128 : vector<8x128xf32> to vector<1x8x128xf32>
    tpu.vector_store %arg10[%c2, %c0_51, %c0_52], %131 {strides = array<i32>} : memref<8x8x128xf32, #tpu.memory_space<vmem>>, vector<1x8x128xf32>,
    %132 = vector.broadcast %120 : vector<8x1xf32> to vector<8x128xf32>
    %133 = arith.cmpf oeq, %118, %132 : vector<8x128xf32>
    %c128_i32_53 = arith.constant 128 : i32
    %134 = vector.broadcast %c128_i32_53 : i32 to vector<8x128xi32>
    %135 = arith.select %133, %50, %134 : vector<8x128xi1>, vector<8x128xi32>
    %cst_54 = arith.constant dense<2147483647> : vector<8xi32>
    %136 = vector.multi_reduction <minsi>, %135, %cst_54 [1] : vector<8x128xi32> to vector<8xi32>
    %137 = vector.shape_cast %136 : vector<8xi32> to vector<8x1xi32>
    %138 = vector.broadcast %137 : vector<8x1xi32> to vector<8x128xi32>
    %139 = arith.cmpi eq, %50, %138 : vector<8x128xi32>
    %140 = arith.extui %139 : vector<8x128xi1> to vector<8x128xi32>
    %141 = arith.sitofp %140 : vector<8x128xi32> to vector<8x128xf32>
    %cst_55 = arith.constant dense<0.000000e+00> : vector<8x128xf32>
    %142 = tpu.matmul %141, %1, %cst_55 {dimension_numbers = #tpu.dot_dimension_numbers<[1], [0], [0], [1], [0, 0, 1, 1], [], []>} : vector<8x128xf32>, vector<128x128xf32>, vector<8x128xf32> -> vector<8x128xf32>
    %cst_56 = arith.constant dense<0.000000e+00> : vector<8x128xf32>
    %143 = tpu.matmul %116, %2, %cst_56 {dimension_numbers = #tpu.dot_dimension_numbers<[1], [0], [0], [1], [0, 0, 1, 1], [], []>} : vector<8x128xf32>, vector<128x128xf32>, vector<8x128xf32> -> vector<8x128xf32>
    %144 = arith.addf %142, %143 : vector<8x128xf32>
    %145 = arith.addf %144, %9 : vector<8x128xf32>
    %146 = math.tanh %145 : vector<8x128xf32>
    %cst_57 = arith.constant dense<0.000000e+00> : vector<8x128xf32>
    %147 = tpu.matmul %146, %3, %cst_57 {dimension_numbers = #tpu.dot_dimension_numbers<[1], [0], [0], [1], [0, 0, 1, 1], [], []>} : vector<8x128xf32>, vector<128x128xf32>, vector<8x128xf32> -> vector<8x128xf32>
    %148 = arith.addf %147, %12 : vector<8x128xf32>
    %cst_58 = arith.constant dense<0xFF800000> : vector<8xf32>
    %149 = vector.multi_reduction <maximumf>, %148, %cst_58 [1] : vector<8x128xf32> to vector<8xf32>
    %150 = vector.shape_cast %149 : vector<8xf32> to vector<8x1xf32>
    %151 = vector.broadcast %150 : vector<8x1xf32> to vector<8x128xf32>
    %152 = arith.subf %148, %151 : vector<8x128xf32>
    %153 = math.exp %152 : vector<8x128xf32>
    %cst_59 = arith.constant dense<0.000000e+00> : vector<8xf32>
    %154 = vector.multi_reduction <add>, %153, %cst_59 [1] : vector<8x128xf32> to vector<8xf32>
    %155 = vector.shape_cast %154 : vector<8xf32> to vector<8x1xf32>
    %156 = math.log %155 : vector<8x1xf32>
    %157 = vector.broadcast %156 : vector<8x1xf32> to vector<8x128xf32>
    %158 = arith.subf %152, %157 : vector<8x128xf32>
    %c3 = arith.constant 3 : index
    %c0_60 = arith.constant 0 : index
    %c0_61 = arith.constant 0 : index
    %159 = vector.load %arg10[%c3, %c0_60, %c0_61] : memref<8x8x128xf32, #tpu.memory_space<vmem>>, vector<1x8x128xf32>
    %160 = vector.shape_cast %159 : vector<1x8x128xf32> to vector<8x128xf32>
    %161 = vector.shape_cast %158 : vector<8x128xf32> to vector<1x8x128xf32>
    tpu.vector_store %arg10[%c3, %c0_60, %c0_61], %161 {strides = array<i32>} : memref<8x8x128xf32, #tpu.memory_space<vmem>>, vector<1x8x128xf32>,
    %162 = vector.broadcast %150 : vector<8x1xf32> to vector<8x128xf32>
    %163 = arith.cmpf oeq, %148, %162 : vector<8x128xf32>
    %c128_i32_62 = arith.constant 128 : i32
    %164 = vector.broadcast %c128_i32_62 : i32 to vector<8x128xi32>
    %165 = arith.select %163, %50, %164 : vector<8x128xi1>, vector<8x128xi32>
    %cst_63 = arith.constant dense<2147483647> : vector<8xi32>
    %166 = vector.multi_reduction <minsi>, %165, %cst_63 [1] : vector<8x128xi32> to vector<8xi32>
    %167 = vector.shape_cast %166 : vector<8xi32> to vector<8x1xi32>
    %168 = vector.broadcast %167 : vector<8x1xi32> to vector<8x128xi32>
    %169 = arith.cmpi eq, %50, %168 : vector<8x128xi32>
    %170 = arith.extui %169 : vector<8x128xi1> to vector<8x128xi32>
    %171 = arith.sitofp %170 : vector<8x128xi32> to vector<8x128xf32>
    %cst_64 = arith.constant dense<0.000000e+00> : vector<8x128xf32>
    %172 = tpu.matmul %171, %1, %cst_64 {dimension_numbers = #tpu.dot_dimension_numbers<[1], [0], [0], [1], [0, 0, 1, 1], [], []>} : vector<8x128xf32>, vector<128x128xf32>, vector<8x128xf32> -> vector<8x128xf32>
    %cst_65 = arith.constant dense<0.000000e+00> : vector<8x128xf32>
    %173 = tpu.matmul %146, %2, %cst_65 {dimension_numbers = #tpu.dot_dimension_numbers<[1], [0], [0], [1], [0, 0, 1, 1], [], []>} : vector<8x128xf32>, vector<128x128xf32>, vector<8x128xf32> -> vector<8x128xf32>
    %174 = arith.addf %172, %173 : vector<8x128xf32>
    %175 = arith.addf %174, %9 : vector<8x128xf32>
    %176 = math.tanh %175 : vector<8x128xf32>
    %cst_66 = arith.constant dense<0.000000e+00> : vector<8x128xf32>
    %177 = tpu.matmul %176, %3, %cst_66 {dimension_numbers = #tpu.dot_dimension_numbers<[1], [0], [0], [1], [0, 0, 1, 1], [], []>} : vector<8x128xf32>, vector<128x128xf32>, vector<8x128xf32> -> vector<8x128xf32>
    %178 = arith.addf %177, %12 : vector<8x128xf32>
    %cst_67 = arith.constant dense<0xFF800000> : vector<8xf32>
    %179 = vector.multi_reduction <maximumf>, %178, %cst_67 [1] : vector<8x128xf32> to vector<8xf32>
    %180 = vector.shape_cast %179 : vector<8xf32> to vector<8x1xf32>
    %181 = vector.broadcast %180 : vector<8x1xf32> to vector<8x128xf32>
    %182 = arith.subf %178, %181 : vector<8x128xf32>
    %183 = math.exp %182 : vector<8x128xf32>
    %cst_68 = arith.constant dense<0.000000e+00> : vector<8xf32>
    %184 = vector.multi_reduction <add>, %183, %cst_68 [1] : vector<8x128xf32> to vector<8xf32>
    %185 = vector.shape_cast %184 : vector<8xf32> to vector<8x1xf32>
    %186 = math.log %185 : vector<8x1xf32>
    %187 = vector.broadcast %186 : vector<8x1xf32> to vector<8x128xf32>
    %188 = arith.subf %182, %187 : vector<8x128xf32>
    %c4 = arith.constant 4 : index
    %c0_69 = arith.constant 0 : index
    %c0_70 = arith.constant 0 : index
    %189 = vector.load %arg10[%c4, %c0_69, %c0_70] : memref<8x8x128xf32, #tpu.memory_space<vmem>>, vector<1x8x128xf32>
    %190 = vector.shape_cast %189 : vector<1x8x128xf32> to vector<8x128xf32>
    %191 = vector.shape_cast %188 : vector<8x128xf32> to vector<1x8x128xf32>
    tpu.vector_store %arg10[%c4, %c0_69, %c0_70], %191 {strides = array<i32>} : memref<8x8x128xf32, #tpu.memory_space<vmem>>, vector<1x8x128xf32>,
    %192 = vector.broadcast %180 : vector<8x1xf32> to vector<8x128xf32>
    %193 = arith.cmpf oeq, %178, %192 : vector<8x128xf32>
    %c128_i32_71 = arith.constant 128 : i32
    %194 = vector.broadcast %c128_i32_71 : i32 to vector<8x128xi32>
    %195 = arith.select %193, %50, %194 : vector<8x128xi1>, vector<8x128xi32>
    %cst_72 = arith.constant dense<2147483647> : vector<8xi32>
    %196 = vector.multi_reduction <minsi>, %195, %cst_72 [1] : vector<8x128xi32> to vector<8xi32>
    %197 = vector.shape_cast %196 : vector<8xi32> to vector<8x1xi32>
    %198 = vector.broadcast %197 : vector<8x1xi32> to vector<8x128xi32>
    %199 = arith.cmpi eq, %50, %198 : vector<8x128xi32>
    %200 = arith.extui %199 : vector<8x128xi1> to vector<8x128xi32>
    %201 = arith.sitofp %200 : vector<8x128xi32> to vector<8x128xf32>
    %cst_73 = arith.constant dense<0.000000e+00> : vector<8x128xf32>
    %202 = tpu.matmul %201, %1, %cst_73 {dimension_numbers = #tpu.dot_dimension_numbers<[1], [0], [0], [1], [0, 0, 1, 1], [], []>} : vector<8x128xf32>, vector<128x128xf32>, vector<8x128xf32> -> vector<8x128xf32>
    %cst_74 = arith.constant dense<0.000000e+00> : vector<8x128xf32>
    %203 = tpu.matmul %176, %2, %cst_74 {dimension_numbers = #tpu.dot_dimension_numbers<[1], [0], [0], [1], [0, 0, 1, 1], [], []>} : vector<8x128xf32>, vector<128x128xf32>, vector<8x128xf32> -> vector<8x128xf32>
    %204 = arith.addf %202, %203 : vector<8x128xf32>
    %205 = arith.addf %204, %9 : vector<8x128xf32>
    %206 = math.tanh %205 : vector<8x128xf32>
    %cst_75 = arith.constant dense<0.000000e+00> : vector<8x128xf32>
    %207 = tpu.matmul %206, %3, %cst_75 {dimension_numbers = #tpu.dot_dimension_numbers<[1], [0], [0], [1], [0, 0, 1, 1], [], []>} : vector<8x128xf32>, vector<128x128xf32>, vector<8x128xf32> -> vector<8x128xf32>
    %208 = arith.addf %207, %12 : vector<8x128xf32>
    %cst_76 = arith.constant dense<0xFF800000> : vector<8xf32>
    %209 = vector.multi_reduction <maximumf>, %208, %cst_76 [1] : vector<8x128xf32> to vector<8xf32>
    %210 = vector.shape_cast %209 : vector<8xf32> to vector<8x1xf32>
    %211 = vector.broadcast %210 : vector<8x1xf32> to vector<8x128xf32>
    %212 = arith.subf %208, %211 : vector<8x128xf32>
    %213 = math.exp %212 : vector<8x128xf32>
    %cst_77 = arith.constant dense<0.000000e+00> : vector<8xf32>
    %214 = vector.multi_reduction <add>, %213, %cst_77 [1] : vector<8x128xf32> to vector<8xf32>
    %215 = vector.shape_cast %214 : vector<8xf32> to vector<8x1xf32>
    %216 = math.log %215 : vector<8x1xf32>
    %217 = vector.broadcast %216 : vector<8x1xf32> to vector<8x128xf32>
    %218 = arith.subf %212, %217 : vector<8x128xf32>
    %c5 = arith.constant 5 : index
    %c0_78 = arith.constant 0 : index
    %c0_79 = arith.constant 0 : index
    %219 = vector.load %arg10[%c5, %c0_78, %c0_79] : memref<8x8x128xf32, #tpu.memory_space<vmem>>, vector<1x8x128xf32>
    %220 = vector.shape_cast %219 : vector<1x8x128xf32> to vector<8x128xf32>
    %221 = vector.shape_cast %218 : vector<8x128xf32> to vector<1x8x128xf32>
    tpu.vector_store %arg10[%c5, %c0_78, %c0_79], %221 {strides = array<i32>} : memref<8x8x128xf32, #tpu.memory_space<vmem>>, vector<1x8x128xf32>,
    %222 = vector.broadcast %210 : vector<8x1xf32> to vector<8x128xf32>
    %223 = arith.cmpf oeq, %208, %222 : vector<8x128xf32>
    %c128_i32_80 = arith.constant 128 : i32
    %224 = vector.broadcast %c128_i32_80 : i32 to vector<8x128xi32>
    %225 = arith.select %223, %50, %224 : vector<8x128xi1>, vector<8x128xi32>
    %cst_81 = arith.constant dense<2147483647> : vector<8xi32>
    %226 = vector.multi_reduction <minsi>, %225, %cst_81 [1] : vector<8x128xi32> to vector<8xi32>
    %227 = vector.shape_cast %226 : vector<8xi32> to vector<8x1xi32>
    %228 = vector.broadcast %227 : vector<8x1xi32> to vector<8x128xi32>
    %229 = arith.cmpi eq, %50, %228 : vector<8x128xi32>
    %230 = arith.extui %229 : vector<8x128xi1> to vector<8x128xi32>
    %231 = arith.sitofp %230 : vector<8x128xi32> to vector<8x128xf32>
    %cst_82 = arith.constant dense<0.000000e+00> : vector<8x128xf32>
    %232 = tpu.matmul %231, %1, %cst_82 {dimension_numbers = #tpu.dot_dimension_numbers<[1], [0], [0], [1], [0, 0, 1, 1], [], []>} : vector<8x128xf32>, vector<128x128xf32>, vector<8x128xf32> -> vector<8x128xf32>
    %cst_83 = arith.constant dense<0.000000e+00> : vector<8x128xf32>
    %233 = tpu.matmul %206, %2, %cst_83 {dimension_numbers = #tpu.dot_dimension_numbers<[1], [0], [0], [1], [0, 0, 1, 1], [], []>} : vector<8x128xf32>, vector<128x128xf32>, vector<8x128xf32> -> vector<8x128xf32>
    %234 = arith.addf %232, %233 : vector<8x128xf32>
    %235 = arith.addf %234, %9 : vector<8x128xf32>
    %236 = math.tanh %235 : vector<8x128xf32>
    %cst_84 = arith.constant dense<0.000000e+00> : vector<8x128xf32>
    %237 = tpu.matmul %236, %3, %cst_84 {dimension_numbers = #tpu.dot_dimension_numbers<[1], [0], [0], [1], [0, 0, 1, 1], [], []>} : vector<8x128xf32>, vector<128x128xf32>, vector<8x128xf32> -> vector<8x128xf32>
    %238 = arith.addf %237, %12 : vector<8x128xf32>
    %cst_85 = arith.constant dense<0xFF800000> : vector<8xf32>
    %239 = vector.multi_reduction <maximumf>, %238, %cst_85 [1] : vector<8x128xf32> to vector<8xf32>
    %240 = vector.shape_cast %239 : vector<8xf32> to vector<8x1xf32>
    %241 = vector.broadcast %240 : vector<8x1xf32> to vector<8x128xf32>
    %242 = arith.subf %238, %241 : vector<8x128xf32>
    %243 = math.exp %242 : vector<8x128xf32>
    %cst_86 = arith.constant dense<0.000000e+00> : vector<8xf32>
    %244 = vector.multi_reduction <add>, %243, %cst_86 [1] : vector<8x128xf32> to vector<8xf32>
    %245 = vector.shape_cast %244 : vector<8xf32> to vector<8x1xf32>
    %246 = math.log %245 : vector<8x1xf32>
    %247 = vector.broadcast %246 : vector<8x1xf32> to vector<8x128xf32>
    %248 = arith.subf %242, %247 : vector<8x128xf32>
    %c6 = arith.constant 6 : index
    %c0_87 = arith.constant 0 : index
    %c0_88 = arith.constant 0 : index
    %249 = vector.load %arg10[%c6, %c0_87, %c0_88] : memref<8x8x128xf32, #tpu.memory_space<vmem>>, vector<1x8x128xf32>
    %250 = vector.shape_cast %249 : vector<1x8x128xf32> to vector<8x128xf32>
    %251 = vector.shape_cast %248 : vector<8x128xf32> to vector<1x8x128xf32>
    tpu.vector_store %arg10[%c6, %c0_87, %c0_88], %251 {strides = array<i32>} : memref<8x8x128xf32, #tpu.memory_space<vmem>>, vector<1x8x128xf32>,
    %252 = vector.broadcast %240 : vector<8x1xf32> to vector<8x128xf32>
    %253 = arith.cmpf oeq, %238, %252 : vector<8x128xf32>
    %c128_i32_89 = arith.constant 128 : i32
    %254 = vector.broadcast %c128_i32_89 : i32 to vector<8x128xi32>
    %255 = arith.select %253, %50, %254 : vector<8x128xi1>, vector<8x128xi32>
    %cst_90 = arith.constant dense<2147483647> : vector<8xi32>
    %256 = vector.multi_reduction <minsi>, %255, %cst_90 [1] : vector<8x128xi32> to vector<8xi32>
    %257 = vector.shape_cast %256 : vector<8xi32> to vector<8x1xi32>
    %258 = vector.broadcast %257 : vector<8x1xi32> to vector<8x128xi32>
    %259 = arith.cmpi eq, %50, %258 : vector<8x128xi32>
    %260 = arith.extui %259 : vector<8x128xi1> to vector<8x128xi32>
    %261 = arith.sitofp %260 : vector<8x128xi32> to vector<8x128xf32>
    %cst_91 = arith.constant dense<0.000000e+00> : vector<8x128xf32>
    %262 = tpu.matmul %261, %1, %cst_91 {dimension_numbers = #tpu.dot_dimension_numbers<[1], [0], [0], [1], [0, 0, 1, 1], [], []>} : vector<8x128xf32>, vector<128x128xf32>, vector<8x128xf32> -> vector<8x128xf32>
    %cst_92 = arith.constant dense<0.000000e+00> : vector<8x128xf32>
    %263 = tpu.matmul %236, %2, %cst_92 {dimension_numbers = #tpu.dot_dimension_numbers<[1], [0], [0], [1], [0, 0, 1, 1], [], []>} : vector<8x128xf32>, vector<128x128xf32>, vector<8x128xf32> -> vector<8x128xf32>
    %264 = arith.addf %262, %263 : vector<8x128xf32>
    %265 = arith.addf %264, %9 : vector<8x128xf32>
    %266 = math.tanh %265 : vector<8x128xf32>
    %cst_93 = arith.constant dense<0.000000e+00> : vector<8x128xf32>
    %267 = tpu.matmul %266, %3, %cst_93 {dimension_numbers = #tpu.dot_dimension_numbers<[1], [0], [0], [1], [0, 0, 1, 1], [], []>} : vector<8x128xf32>, vector<128x128xf32>, vector<8x128xf32> -> vector<8x128xf32>
    %268 = arith.addf %267, %12 : vector<8x128xf32>
    %cst_94 = arith.constant dense<0xFF800000> : vector<8xf32>
    %269 = vector.multi_reduction <maximumf>, %268, %cst_94 [1] : vector<8x128xf32> to vector<8xf32>
    %270 = vector.shape_cast %269 : vector<8xf32> to vector<8x1xf32>
    %271 = vector.broadcast %270 : vector<8x1xf32> to vector<8x128xf32>
    %272 = arith.subf %268, %271 : vector<8x128xf32>
    %273 = math.exp %272 : vector<8x128xf32>
    %cst_95 = arith.constant dense<0.000000e+00> : vector<8xf32>
    %274 = vector.multi_reduction <add>, %273, %cst_95 [1] : vector<8x128xf32> to vector<8xf32>
    %275 = vector.shape_cast %274 : vector<8xf32> to vector<8x1xf32>
    %276 = math.log %275 : vector<8x1xf32>
    %277 = vector.broadcast %276 : vector<8x1xf32> to vector<8x128xf32>
    %278 = arith.subf %272, %277 : vector<8x128xf32>
    %c7 = arith.constant 7 : index
    %c0_96 = arith.constant 0 : index
    %c0_97 = arith.constant 0 : index
    %279 = vector.load %arg10[%c7, %c0_96, %c0_97] : memref<8x8x128xf32, #tpu.memory_space<vmem>>, vector<1x8x128xf32>
    %280 = vector.shape_cast %279 : vector<1x8x128xf32> to vector<8x128xf32>
    %281 = vector.shape_cast %278 : vector<8x128xf32> to vector<1x8x128xf32>
    tpu.vector_store %arg10[%c7, %c0_96, %c0_97], %281 {strides = array<i32>} : memref<8x8x128xf32, #tpu.memory_space<vmem>>, vector<1x8x128xf32>,
    return
  }
}

</mosaic_0001>

<bundles_post_ra>
// kernel: tpu_custom_call.1
= control target key start
LH: loop header
LB: loop body
LE: loop exit
PB: predicated region body
PF: predicated region fallthrough
CT: control target
= control target key end

     0   :  { %15 = vsyncpa [#allocation3], 0  ;;  %s6646_s0 = inlined_call_operand.hbm [shape: f32[64,128], index: 0, kind: input, shape index: {}]   ;;  %s6647_s1 = inlined_call_operand.hbm [shape: f32[8,128], index: 1, kind: input, shape index: {}]   ;;  %s6648_s2 = inlined_call_operand.hbm [shape: f32[128,128], index: 2, kind: input, shape index: {}]   ;;  %s6649_s3 = inlined_call_operand.hbm [shape: f32[128,128], index: 3, kind: input, shape index: {}]   ;;  %s6650_s4 = inlined_call_operand.vmem [shape: f32[1,128], index: 4, kind: input, shape index: {}]   ;;  %s6651_s5 = inlined_call_operand.hbm [shape: f32[128,128], index: 5, kind: input, shape index: {}]   ;;  %s6652_s6 = inlined_call_operand.hbm [shape: f32[128,128], index: 6, kind: input, shape index: {}]   ;;  %s6653_s7 = inlined_call_operand.vmem [shape: f32[1,128], index: 7, kind: input, shape index: {}]   ;;  %s6654_s8 = inlined_call_operand.hbm [shape: f32[128,128], index: 8, kind: input, shape index: {}]   ;;  %s6655_s9 = inlined_call_operand.vmem [shape: f32[1,128], index: 9, kind: input, shape index: {}]   ;;  %s6656_s10 = inlined_call_operand.hbm [shape: f32[8,8,128], index: 10, kind: output, shape index: {}]  }
   0x1   :  { %16 = vsyncpa [#allocation6], 0 }
   0x2   :  { %17 = vsyncpa [#allocation9], 0 }
   0x3   :  { %18 = vsyncpa [#allocation12], 0 }
   0x4   :  { %19 = vsyncpa [#allocation4], 0  ;;  %s5681_s13 = smov [#allocation5]   ;;  %s5495_s17 = scalar_lea.hbm %s6647_s1, 128 }
   0x5   :  { %s38_s14 = sshll.u32 %s5681_s13, 4  ;;  %p5496_p0 = scmp.ne.s32.totalorder %s6647_s1, %s5495_s17  ;;  %s39_s14 = int_to_ptr.vmem [resolvable:$true] %s38_s14 }
   0x6   :  { %p5499_p1 = scmp.lt.u32.totalorder %s5495_s17, %s6647_s1 }
   0x8   :  { %p5501_p2 = pnand %p5499_p1, %p5496_p0 }
   0xa   :  { %5504 = shalt.err (!%p5501_p2)
}
   0xb   :  { %s5505_s22 = scalar_lea.vmem %s39_s14, 128  ;;  %p5510_p4 = scmp.lt.s32.totalorder %s39_s14, %s39_s14 }
   0xc   :  { %p5506_p3 = scmp.ne.s32.totalorder %s39_s14, %s5505_s22  ;;  %p5511_p5 = scmp.lt.s32.totalorder %s5505_s22, %s5505_s22 }
   0xe   :  { %p5512_p6 = por %p5511_p5, %p5510_p4 }
  0x10   :  { %p5513_p7 = pnand %p5512_p6, %p5506_p3 }
  0x12   :  { %5516 = shalt.err (!%p5513_p7)
}
  0x13   :  { %41 = dma.hbm_to_vmem [thread:$0]  %s6647_s1, 128, %s39_s14, [#allocation6]  }
  0x14   :  { %s5682_s25 = smov [#allocation8]   ;;  %s5683_s27 = smov [#allocation11]  }
  0x15   :  { %s59_s26 = sshll.u32 %s5682_s25, 4  ;;  %s85_s28 = sshll.u32 %s5683_s27, 4  ;;  %s60_s26 = int_to_ptr.vmem [resolvable:$true] %s59_s26  ;;  %s86_s28 = int_to_ptr.vmem [resolvable:$true] %s85_s28 }
  0x16   :  { %s5517_s11 = scalar_lea.hbm %s6649_s3, 2048 }
  0x17   :  { %p5518_p8 = scmp.ne.s32.totalorder %s6649_s3, %s5517_s11  ;;  %p5521_p9 = scmp.lt.u32.totalorder %s5517_s11, %s6649_s3 }
  0x19   :  { %p5523_p10 = pnand %p5521_p9, %p5518_p8 }
  0x1b   :  { %5526 = shalt.err (!%p5523_p10)
}
  0x1c   :  { %s5527_s1 = scalar_lea.vmem %s60_s26, 2048  ;;  %p5532_p12 = scmp.lt.s32.totalorder %s60_s26, %s60_s26 }
  0x1d   :  { %p5528_p11 = scmp.ne.s32.totalorder %s60_s26, %s5527_s1  ;;  %p5533_p13 = scmp.lt.s32.totalorder %s5527_s1, %s5527_s1 }
  0x1f   :  { %p5534_p0 = por %p5533_p13, %p5532_p12 }
  0x21   :  { %p5535_p1 = pnand %p5534_p0, %p5528_p11 }
  0x23   :  { %5538 = shalt.err (!%p5535_p1)
}
  0x24   :  { %s5684_s14 = smov 128   ;;  %s5685_s17 = smov 8  }
  0x25   :  { %65 = dma.hbm_to_vmem [thread:$0]  %s6649_s3, 2048, %s60_s26, [#allocation9], %s5684_s14, %s5684_s14, %s5685_s17  }
  0x26   :  { %s5539_s22 = scalar_lea.hbm %s6652_s6, 2048 }
  0x27   :  { %p5540_p2 = scmp.ne.s32.totalorder %s6652_s6, %s5539_s22  ;;  %p5543_p3 = scmp.lt.u32.totalorder %s5539_s22, %s6652_s6 }
  0x29   :  { %p5545_p4 = pnand %p5543_p3, %p5540_p2 }
  0x2b   :  { %5548 = shalt.err (!%p5545_p4)
}
  0x2c   :  { %s5549_s29 = scalar_lea.vmem %s86_s28, 2048  ;;  %p5554_p6 = scmp.lt.s32.totalorder %s86_s28, %s86_s28 }
  0x2d   :  { %p5550_p5 = scmp.ne.s32.totalorder %s86_s28, %s5549_s29  ;;  %p5555_p7 = scmp.lt.s32.totalorder %s5549_s29, %s5549_s29 }
  0x2f   :  { %p5556_p8 = por %p5555_p7, %p5554_p6 }
  0x31   :  { %p5557_p9 = pnand %p5556_p8, %p5550_p5 }
  0x33   :  { %5560 = shalt.err (!%p5557_p9)
}
  0x34   :  { %91 = dma.hbm_to_vmem [thread:$0]  %s6652_s6, 2048, %s86_s28, [#allocation12], %s5684_s14, %s5684_s14, %s5685_s17  }
  0x35   :  { %s5686_s30 = smov [#allocation2]   ;;  %s5687_s12 = smov [#allocation7]  }
  0x36   :  { %s25_s11 = sshll.u32 %s5686_s30, 4  ;;  %s47_s13 = sshll.u32 %s5687_s12, 4  ;;  %s26_s11 = int_to_ptr.vmem [resolvable:$true] %s25_s11  ;;  %s48_s13 = int_to_ptr.vmem [resolvable:$true] %s47_s13 }
  0x37   :  { %s5561_s1 = scalar_lea.hbm %s6646_s0, 1024 }
  0x38   :  { %p5562_p10 = scmp.ne.s32.totalorder %s6646_s0, %s5561_s1  ;;  %p5565_p11 = scmp.lt.u32.totalorder %s5561_s1, %s6646_s0 }
  0x3a   :  { %p5567_p12 = pnand %p5565_p11, %p5562_p10 }
  0x3c   :  { %5570 = shalt.err (!%p5567_p12)
}
  0x3d   :  { %s5571_s6 = scalar_lea.vmem %s26_s11, 1024  ;;  %p5576_p0 = scmp.lt.s32.totalorder %s26_s11, %s26_s11 }
  0x3e   :  { %p5572_p13 = scmp.ne.s32.totalorder %s26_s11, %s5571_s6  ;;  %p5577_p1 = scmp.lt.s32.totalorder %s5571_s6, %s5571_s6 }
  0x40   :  { %p5578_p2 = por %p5577_p1, %p5576_p0 }
  0x42   :  { %p5579_p3 = pnand %p5578_p2, %p5572_p13 }
  0x44   :  { %5582 = shalt.err (!%p5579_p3)
}
  0x45   :  { %31 = dma.hbm_to_vmem [thread:$0]  %s6646_s0, 1024, %s26_s11, [#allocation3], %s5684_s14, %s5684_s14, %s5685_s17  }
  0x46   :  { %s5583_s25 = scalar_lea.hbm %s6648_s2, 2048 }
  0x47   :  { %p5584_p4 = scmp.ne.s32.totalorder %s6648_s2, %s5583_s25  ;;  %p5587_p5 = scmp.lt.u32.totalorder %s5583_s25, %s6648_s2 }
  0x49   :  { %p5589_p6 = pnand %p5587_p5, %p5584_p4 }
  0x4b   :  { %5592 = shalt.err (!%p5589_p6)
}
  0x4c   :  { %s5593_s30 = scalar_lea.vmem %s48_s13, 2048  ;;  %p5598_p8 = scmp.lt.s32.totalorder %s48_s13, %s48_s13 }
  0x4d   :  { %p5594_p7 = scmp.ne.s32.totalorder %s48_s13, %s5593_s30  ;;  %p5599_p9 = scmp.lt.s32.totalorder %s5593_s30, %s5593_s30 }
  0x4f   :  { %p5600_p10 = por %p5599_p9, %p5598_p8 }
  0x51   :  { %p5601_p11 = pnand %p5600_p10, %p5594_p7 }
  0x53   :  { %5604 = shalt.err (!%p5601_p11)
}
  0x54   :  { %53 = dma.hbm_to_vmem [thread:$0]  %s6648_s2, 2048, %s48_s13, [#allocation6], %s5684_s14, %s5684_s14, %s5685_s17  }
  0x55   :  { %s5688_s12 = smov [#allocation10]   ;;  %s5689_s16 = smov [#allocation13]  }
  0x56   :  { %s73_s15 = sshll.u32 %s5688_s12, 4  ;;  %s99_s1 = sshll.u32 %s5689_s16, 4  ;;  %s74_s15 = int_to_ptr.vmem [resolvable:$true] %s73_s15  ;;  %s100_s1 = int_to_ptr.vmem [resolvable:$true] %s99_s1 }
  0x57   :  { %s5605_s20 = scalar_lea.hbm %s6651_s5, 2048 }
  0x58   :  { %p5606_p12 = scmp.ne.s32.totalorder %s6651_s5, %s5605_s20  ;;  %p5609_p13 = scmp.lt.u32.totalorder %s5605_s20, %s6651_s5 }
  0x5a   :  { %p5611_p0 = pnand %p5609_p13, %p5606_p12 }
  0x5c   :  { %5614 = shalt.err (!%p5611_p0)
}
  0x5d   :  { %s5615_s2 = scalar_lea.vmem %s74_s15, 2048  ;;  %p5620_p2 = scmp.lt.s32.totalorder %s74_s15, %s74_s15 }
  0x5e   :  { %p5616_p1 = scmp.ne.s32.totalorder %s74_s15, %s5615_s2  ;;  %p5621_p3 = scmp.lt.s32.totalorder %s5615_s2, %s5615_s2 }
  0x60   :  { %p5622_p4 = por %p5621_p3, %p5620_p2 }
  0x62   :  { %p5623_p5 = pnand %p5622_p4, %p5616_p1 }
  0x64   :  { %5626 = shalt.err (!%p5623_p5)
}
  0x65   :  { %79 = dma.hbm_to_vmem [thread:$0]  %s6651_s5, 2048, %s74_s15, [#allocation9], %s5684_s14, %s5684_s14, %s5685_s17  }
  0x66   :  { %s5627_s27 = scalar_lea.hbm %s6654_s8, 2048 }
  0x67   :  { %p5628_p6 = scmp.ne.s32.totalorder %s6654_s8, %s5627_s27  ;;  %p5631_p7 = scmp.lt.u32.totalorder %s5627_s27, %s6654_s8 }
  0x69   :  { %p5633_p8 = pnand %p5631_p7, %p5628_p6 }
  0x6b   :  { %5636 = shalt.err (!%p5633_p8)
}
  0x6c   :  { %s5637_s0 = scalar_lea.vmem %s100_s1, 2048  ;;  %p5642_p10 = scmp.lt.s32.totalorder %s100_s1, %s100_s1 }
  0x6d   :  { %p5638_p9 = scmp.ne.s32.totalorder %s100_s1, %s5637_s0  ;;  %p5643_p11 = scmp.lt.s32.totalorder %s5637_s0, %s5637_s0 }
  0x6f   :  { %p5644_p12 = por %p5643_p11, %p5642_p10 }
  0x71   :  { %p5645_p13 = pnand %p5644_p12, %p5638_p9 }
  0x73   :  { %5648 = shalt.err (!%p5645_p13)
}
  0x74   :  { %105 = dma.hbm_to_vmem [thread:$0]  %s6654_s8, 2048, %s100_s1, [#allocation12], %s5684_s14, %s5684_s14, %s5685_s17  }
  0x75   :  { %5671 = dma.done.wait [#allocation3], 1024  }
  0x76   :  { %5672 = vsyncadd [#allocation3], 4294966272 }
  0x77   :  { %5673 = dma.done.wait [#allocation6], 2176  }
  0x78   :  { %5674 = vsyncadd [#allocation6], 4294965120 }
  0x79   :  { %5675 = dma.done.wait [#allocation9], 4096  }
  0x7a   :  { %5676 = vsyncadd [#allocation9], 4294963200 }
  0x7b   :  { %5677 = dma.done.wait [#allocation12], 4096  }
  0x7c   :  { %5678 = vsyncadd [#allocation12], 4294963200  ;;  %v5690_v0 = vmov 0.0|0.0   ;;  %vm5691_vm0 = vmmov 0   ;;  %v5692_v1 = vmov 0.0   ;;  %v222_v2 = vld [vmem:[#allocation7] sm:$0xff] }
  0x7d   :  { %4647 = vmatprep.subr.bf16.mxu1 %v5690_v0  ;;  %3527 = vmatprep.mubr.msk.f32.mxu1 %vm5691_vm0, %v5692_v1  ;;  %v223_v3 = vld [vmem:[#allocation7 + $0x8] sm:$0xff]  ;;  %v129_v4 = vld [vmem:[#allocation8] sm:$0xff]  ;;  %v224_v7 = vld [vmem:[#allocation7 + $0x10] sm:$0xff] }
  0x7e   :  { %v4615_v5 = vpack.c.bf16 %v223_v3, %v222_v2  ;;  %v130_v6 = vld [vmem:[#allocation8 + $0x8] sm:$0xff]  ;;  %v225_v8 = vld [vmem:[#allocation7 + $0x18] sm:$0xff]  ;;  %v131_v11 = vld [vmem:[#allocation8 + $0x10] sm:$0xff] }
  0x7f   :  { %v5855_v9 = vpack.c.bf16 %v130_v6, %v129_v4  ;;  %v4619_v10 = vpack.c.bf16 %v225_v8, %v224_v7  ;;  %v132_v12 = vld [vmem:[#allocation8 + $0x18] sm:$0xff]  ;;  %v226_v13 = vld [vmem:[#allocation7 + $0x20] sm:$0xff]  ;;  %v227_v14 = vld [vmem:[#allocation7 + $0x28] sm:$0xff] }
  0x80   :  { %4616 = vmatprep.subr.bf16.mxu0 %v4615_v5  ;;  %v5858_v15 = vpack.c.bf16 %v132_v12, %v131_v11  ;;  %v4623_v16 = vpack.c.bf16 %v227_v14, %v226_v13  ;;  %v133_v17 = vld [vmem:[#allocation8 + $0x20] sm:$0xff]  ;;  %v134_v18 = vld [vmem:[#allocation8 + $0x28] sm:$0xff]  ;;  %v228_v19 = vld [vmem:[#allocation7 + $0x30] sm:$0xff] }
  0x81   :  { %4618 = vmatpush3.bf16.msra.mxu0 %v4615_v5  ;;  %4649 = vmatpush3.bf16.msra.mxu1 %v5855_v9  ;;  %v229_v20 = vld [vmem:[#allocation7 + $0x38] sm:$0xff]  ;;  %v5862_v21 = vpack.c.bf16 %v134_v18, %v133_v17  ;;  %v135_v23 = vld [vmem:[#allocation8 + $0x30] sm:$0xff]  ;;  %v230_v25 = vld [vmem:[#allocation7 + $0x40] sm:$0xff] }
  0x82   :  { %4620 = vmatprep.subr.bf16.mxu0 %v4619_v10  ;;  %4650 = vmatprep.subr.bf16.mxu1 %v5690_v0  ;;  %v4627_v22 = vpack.c.bf16 %v229_v20, %v228_v19  ;;  %v136_v24 = vld [vmem:[#allocation8 + $0x38] sm:$0xff]  ;;  %v231_v26 = vld [vmem:[#allocation7 + $0x48] sm:$0xff]  ;;  %v137_v30 = vld [vmem:[#allocation8 + $0x40] sm:$0xff] }
  0x83   :  { %v214_v27 = vld [vmem:[#allocation2] sm:$0xff]  ;;  %v5866_v28 = vpack.c.bf16 %v136_v24, %v135_v23  ;;  %v4631_v29 = vpack.c.bf16 %v231_v26, %v230_v25  ;;  %v138_v31 = vld [vmem:[#allocation8 + $0x48] sm:$0xff]  ;;  %v232_v32 = vld [vmem:[#allocation7 + $0x50] sm:$0xff] }
  0x84   :  { %3483 = vmatprep.mubr.f32.mxu0 %v214_v27  ;;  %v233_v33 = vld [vmem:[#allocation7 + $0x58] sm:$0xff]  ;;  %v5870_v34 = vpack.c.bf16 %v138_v31, %v137_v30  ;;  %v139_v36 = vld [vmem:[#allocation8 + $0x50] sm:$0xff]  ;;  %v234_v38 = vld [vmem:[#allocation7 + $0x60] sm:$0xff] }
  0x85   :  { %4622 = vmatpush3.bf16.msra.mxu0 %v4619_v10  ;;  %4652 = vmatpush3.bf16.msra.mxu1 %v5858_v15  ;;  %v4635_v35 = vpack.c.bf16 %v233_v33, %v232_v32  ;;  %v140_v37 = vld [vmem:[#allocation8 + $0x58] sm:$0xff]  ;;  %v235_v39 = vld [vmem:[#allocation7 + $0x68] sm:$0xff]  ;;  %v141_v42 = vld [vmem:[#allocation8 + $0x60] sm:$0xff] }
  0x86   :  { %4624 = vmatprep.subr.bf16.mxu0 %v4623_v16  ;;  %4653 = vmatprep.subr.bf16.mxu1 %v5690_v0  ;;  %v5874_v40 = vpack.c.bf16 %v140_v37, %v139_v36  ;;  %v4639_v41 = vpack.c.bf16 %v235_v39, %v234_v38  ;;  %v142_v43 = vld [vmem:[#allocation8 + $0x68] sm:$0xff]  ;;  %v236_v44 = vld [vmem:[#allocation7 + $0x70] sm:$0xff]  ;;  %v237_v45 = vld [vmem:[#allocation7 + $0x78] sm:$0xff] }
  0x87   :  { %v5878_v46 = vpack.c.bf16 %v142_v43, %v141_v42  ;;  %v4643_v47 = vpack.c.bf16 %v237_v45, %v236_v44  ;;  %v143_v48 = vld [vmem:[#allocation8 + $0x70] sm:$0xff]  ;;  %v144_v49 = vld [vmem:[#allocation8 + $0x78] sm:$0xff]  ;;  %v215_v51 = vld [vmem:[#allocation2 + $0x8] sm:$0xff] }
  0x88   :  { %v5882_v50 = vpack.c.bf16 %v144_v49, %v143_v48  ;;  %v216_v52 = vld [vmem:[#allocation2 + $0x10] sm:$0xff]  ;;  %v217_v53 = vld [vmem:[#allocation2 + $0x18] sm:$0xff]  ;;  %v218_v54 = vld [vmem:[#allocation2 + $0x20] sm:$0xff] }
  0x89   :  { %4626 = vmatpush3.bf16.msra.mxu0 %v4623_v16  ;;  %4655 = vmatpush3.bf16.msra.mxu1 %v5862_v21  ;;  %v219_v55 = vld [vmem:[#allocation2 + $0x28] sm:$0xff]  ;;  %v220_v56 = vld [vmem:[#allocation2 + $0x30] sm:$0xff]  ;;  %v221_v57 = vld [vmem:[#allocation2 + $0x38] sm:$0xff] }
  0x8a   :  { %4628 = vmatprep.subr.bf16.mxu0 %v4627_v22  ;;  %4656 = vmatprep.subr.bf16.mxu1 %v5690_v0  ;;  %v5928_v58 = vld [vmem:[%s6650_s4] ss:$0 sm:$0xff]  ;;  %v162_v36 = vld [vmem:[#allocation11 + $0x8] sm:$0xff]  ;;  %v163_v38 = vld [vmem:[#allocation11 + $0x10] sm:$0xff] }
  0x8b   :  { %v164_v39 = vld [vmem:[#allocation11 + $0x18] sm:$0xff]  ;;  %v166_v42 = vld [vmem:[#allocation11 + $0x28] sm:$0xff]  ;;  %v167_v44 = vld [vmem:[#allocation11 + $0x30] sm:$0xff] }
  0x8c   :  { %v168_v45 = vld [vmem:[#allocation11 + $0x38] sm:$0xff]  ;;  %v170_v48 = vld [vmem:[#allocation11 + $0x48] sm:$0xff] }
  0x8d   :  { %4630 = vmatpush3.bf16.msra.mxu0 %v4627_v22  ;;  %4658 = vmatpush3.bf16.msra.mxu1 %v5866_v28 }
  0x8e   :  { %4632 = vmatprep.subr.bf16.mxu0 %v4631_v29  ;;  %4659 = vmatprep.subr.bf16.mxu1 %v5690_v0 }
  0x91   :  { %4634 = vmatpush3.bf16.msra.mxu0 %v4631_v29  ;;  %4661 = vmatpush3.bf16.msra.mxu1 %v5870_v34 }
  0x92   :  { %4636 = vmatprep.subr.bf16.mxu0 %v4635_v35  ;;  %4662 = vmatprep.subr.bf16.mxu1 %v5690_v0 }
  0x95   :  { %4638 = vmatpush3.bf16.msra.mxu0 %v4635_v35  ;;  %4664 = vmatpush3.bf16.msra.mxu1 %v5874_v40  ;;  %v161_v35 = vld [vmem:[#allocation11] sm:$0xff] }
  0x96   :  { %4640 = vmatprep.subr.bf16.mxu0 %v4639_v41  ;;  %4665 = vmatprep.subr.bf16.mxu1 %v5690_v0  ;;  %v6038_v37 = vpack.c.bf16 %v162_v36, %v161_v35  ;;  %v179_v36 = vld [vmem:[#allocation13 + $0x10] sm:$0xff] }
  0x99   :  { %4642 = vmatpush3.bf16.msra.mxu0 %v4639_v41  ;;  %4667 = vmatpush3.bf16.msra.mxu1 %v5878_v46  ;;  %v165_v41 = vld [vmem:[#allocation11 + $0x20] sm:$0xff] }
  0x9a   :  { %4644 = vmatprep.subr.bf16.mxu0 %v4643_v47  ;;  %4668 = vmatprep.subr.bf16.mxu1 %v5690_v0  ;;  %v6046_v43 = vpack.c.bf16 %v166_v42, %v165_v41 }
  0x9d   :  { %4646 = vmatpush3.bf16.msra.mxu0 %v4643_v47  ;;  %4670 = vmatpush3.bf16.msra.mxu1 %v5882_v50  ;;  %v169_v47 = vld [vmem:[#allocation11 + $0x40] sm:$0xff] }
  0x9e   :  { %4671 = vmatprep.subr.bf16.mxu0 %v5690_v0  ;;  %4695 = vmatprep.subr.bf16.mxu1 %v5690_v0  ;;  %v6054_v49 = vpack.c.bf16 %v170_v48, %v169_v47  ;;  %v185_v48 = vld [vmem:[#allocation13 + $0x40] sm:$0xff] }
  0xa0   :  { %3484 = vmatmul.mubr.f32.vlgmr.msra.gmra.mrb[0].mxu0 %v215_v51  ;;  %3528 = vmatmul.mubr.f32.vlgmr.msra.gmra.mrb[0].mxu1 %v5692_v1 }
  0xa1   :  { %4673 = vmatpush3.bf16.msra.mxu0 %v5855_v9  ;;  %4697 = vmatpush3.bf16.msra.mxu1 %v5855_v9 }
  0xa2   :  { %4674 = vmatprep.subr.bf16.mxu0 %v5690_v0  ;;  %4698 = vmatprep.subr.bf16.mxu1 %v5690_v0 }
  0xa3   :  { %3597 = vmatprep.mubr.msk.f32.mxu1 %vm5691_vm0, %v5692_v1  ;;  %3486 = vmatprep.mubr.f32.mxu0 %v216_v52 }
  0xa4   :  { %3487 = vmatmul.mubr.f32.gmra.mrb[2].mxu0 %v217_v53 }
  0xa5   :  { %4676 = vmatpush3.bf16.msra.mxu0 %v5858_v15  ;;  %4700 = vmatpush3.bf16.msra.mxu1 %v5858_v15 }
  0xa6   :  { %4677 = vmatprep.subr.bf16.mxu0 %v5690_v0  ;;  %4701 = vmatprep.subr.bf16.mxu1 %v5690_v0 }
  0xa7   :  { %3489 = vmatprep.mubr.f32.mxu0 %v218_v54  ;;  %v145_v54 = vld [vmem:[#allocation10] sm:$0xff] }
  0xa8   :  { %3490 = vmatmul.mubr.f32.gmra.mrb[4].mxu0 %v219_v55  ;;  %v146_v55 = vld [vmem:[#allocation10 + $0x8] sm:$0xff] }
  0xa9   :  { %4679 = vmatpush3.bf16.msra.mxu0 %v5862_v21  ;;  %4703 = vmatpush3.bf16.msra.mxu1 %v5862_v21 }
  0xaa   :  { %4680 = vmatprep.subr.bf16.mxu0 %v5690_v0  ;;  %4704 = vmatprep.subr.bf16.mxu1 %v5690_v0 }
  0xab   :  { %3492 = vmatprep.mubr.f32.mxu0 %v220_v56  ;;  %v6060_v56 = vpack.c.bf16 %v146_v55, %v145_v54  ;;  %v187_v54 = vld [vmem:[#allocation13 + $0x50] sm:$0xff]  ;;  %v188_v55 = vld [vmem:[#allocation13 + $0x58] sm:$0xff] }
  0xac   :  { %3493 = vmatmul.mubr.f32.gmra.mrb[6].mxu0 %v221_v57  ;;  %v147_v57 = vld [vmem:[#allocation10 + $0x10] sm:$0xff] }
  0xad   :  { %4682 = vmatpush3.bf16.msra.mxu0 %v5866_v28  ;;  %4706 = vmatpush3.bf16.msra.mxu1 %v5866_v28 }
  0xae   :  { %4683 = vmatprep.subr.bf16.mxu0 %v5690_v0  ;;  %4707 = vmatprep.subr.bf16.mxu1 %v5690_v0 }
  0xaf   :  { %3562 = vmatprep.mubr.msk.f32.mxu0 %vm5691_vm0, %v5692_v1 }
  0xb1   :  { %4685 = vmatpush3.bf16.msra.mxu0 %v5870_v34  ;;  %4709 = vmatpush3.bf16.msra.mxu1 %v5870_v34 }
  0xb2   :  { %4686 = vmatprep.subr.bf16.mxu0 %v5690_v0  ;;  %4710 = vmatprep.subr.bf16.mxu1 %v5690_v0 }
  0xb5   :  { %4688 = vmatpush3.bf16.msra.mxu0 %v5874_v40  ;;  %4712 = vmatpush3.bf16.msra.mxu1 %v5874_v40 }
  0xb6   :  { %4689 = vmatprep.subr.bf16.mxu0 %v5690_v0  ;;  %4713 = vmatprep.subr.bf16.mxu1 %v5690_v0 }
  0xb9   :  { %4691 = vmatpush3.bf16.msra.mxu0 %v5878_v46  ;;  %4715 = vmatpush3.bf16.msra.mxu1 %v5878_v46 }
  0xba   :  { %4692 = vmatprep.subr.bf16.mxu0 %v5690_v0  ;;  %4716 = vmatprep.subr.bf16.mxu1 %v5690_v0 }
  0xbd   :  { %4694 = vmatpush3.bf16.msra.mxu0 %v5882_v50  ;;  %4718 = vmatpush3.bf16.msra.mxu1 %v5882_v50 }
  0xbe   :  { %4719 = vmatprep.subr.bf16.mxu0 %v5690_v0  ;;  %4743 = vmatprep.subr.bf16.mxu1 %v5690_v0 }
 0x173   :  { %v3485_v59 = vpop.f32.mrb[0].mxu0  ;;  %v409_v60 = vpop.f32.mrb[0].mxu1 }
 0x174   :  { %v304_v61 = vpop.f32.mrb[1].mxu0  ;;  %v3529_v62 = vpop.f32.mrb[1].mxu1  ;;  %v310_v11 = vadd.f32 %v3485_v59, %v5928_v58  ;;  %v148_v59 = vld [vmem:[#allocation10 + $0x18] sm:$0xff] }
 0x175   :  { %v305_v63 = vadd.f32 %v5928_v58, %v304_v61  ;;  %v6063_v61 = vpack.c.bf16 %v148_v59, %v147_v57  ;;  %v149_v62 = vld [vmem:[#allocation10 + $0x20] sm:$0xff]  ;;  %v6148_v57 = vpack.c.bf16 %v188_v55, %v187_v54 }
 0x176   :  { %v189_v59 = vld [vmem:[#allocation13 + $0x60] sm:$0xff] }
 0x177   :  { %v413_v2 = vadd.f32 %v409_v60, %v305_v63  ;;  %v3488_v4 = vpop.f32.mrb[2].mxu0  ;;  %v150_v63 = vld [vmem:[#allocation10 + $0x28] sm:$0xff] }
 0x178   :  { %v314_v5 = vpop.f32.mrb[3].mxu0  ;;  %v320_v23 = vadd.f32 %v3488_v4, %v5928_v58  ;;  %v152_v4 = vld [vmem:[#allocation10 + $0x38] sm:$0xff] }
 0x179   :  { %5429 = vtanh.f32 %v413_v2  ;;  %v315_v17 = vadd.f32 %v5928_v58, %v314_v5  ;;  %v6069_v2 = vpack.c.bf16 %v150_v63, %v149_v62  ;;  %v191_v63 = vld [vmem:[#allocation13 + $0x70] sm:$0xff] }
 0x17b   :  { %v5949_v6 = vpop.f32.mrb[4].mxu0 }
 0x17c   :  { %v5951_v7 = vpop.f32.mrb[5].mxu0 }
 0x17d   :  { %v325_v29 = vadd.f32 %v5928_v58, %v5951_v7  ;;  %v154_v7 = vld [vmem:[#allocation10 + $0x48] sm:$0xff] }
 0x17f   :  { %v5953_v8 = vpop.f32.mrb[6].mxu0 }
 0x180   :  { %v5955_v10 = vpop.f32.mrb[7].mxu0 }
 0x183   :  { %v5430_v3 = vpop.eup %5429 }
 0x184   :  { %3563 = vmatmul.mubr.f32.vlgmr.msra.gmra.mrb[8].mxu0 %v5430_v3  ;;  %v151_v3 = vld [vmem:[#allocation10 + $0x30] sm:$0xff] }
 0x185   :  { %4721 = vmatpush3.bf16.msra.mxu0 %v5855_v9  ;;  %3632 = vmatprep.mubr.msk.f32.mxu0 %vm5691_vm0, %v5692_v1  ;;  %v6073_v5 = vpack.c.bf16 %v152_v4, %v151_v3  ;;  %v192_v3 = vld [vmem:[#allocation13 + $0x78] sm:$0xff] }
 0x186   :  { %4722 = vmatprep.subr.bf16.mxu0 %v5690_v0  ;;  %v6155_v4 = vpack.c.bf16 %v192_v3, %v191_v63 }
 0x189   :  { %4724 = vmatpush3.bf16.msra.mxu0 %v5858_v15 }
 0x18a   :  { %4725 = vmatprep.subr.bf16.mxu0 %v5690_v0 }
 0x18d   :  { %4727 = vmatpush3.bf16.msra.mxu0 %v5862_v21 }
 0x18e   :  { %4728 = vmatprep.subr.bf16.mxu0 %v5690_v0 }
 0x191   :  { %4730 = vmatpush3.bf16.msra.mxu0 %v5866_v28 }
 0x192   :  { %4731 = vmatprep.subr.bf16.mxu0 %v5690_v0 }
 0x195   :  { %4733 = vmatpush3.bf16.msra.mxu0 %v5870_v34 }
 0x196   :  { %4734 = vmatprep.subr.bf16.mxu0 %v5690_v0 }
 0x199   :  { %4736 = vmatpush3.bf16.msra.mxu0 %v5874_v40 }
 0x19a   :  { %4737 = vmatprep.subr.bf16.mxu0 %v5690_v0 }
 0x19d   :  { %4739 = vmatpush3.bf16.msra.mxu0 %v5878_v46 }
 0x19e   :  { %4740 = vmatprep.subr.bf16.mxu0 %v5690_v0 }
 0x1a1   :  { %4742 = vmatpush3.bf16.msra.mxu0 %v5882_v50 }
 0x1a2   :  { %4767 = vmatprep.subr.bf16.mxu0 %v5690_v0 }
 0x257   :  { %v481_v12 = vpop.f32.mrb[8].mxu0 }
 0x258   :  { %v485_v13 = vadd.f32 %v481_v12, %v310_v11  ;;  %v3564_v14 = vpop.f32.mrb[9].mxu0  ;;  %v155_v11 = vld [vmem:[#allocation10 + $0x50] sm:$0xff]  ;;  %v156_v12 = vld [vmem:[#allocation10 + $0x58] sm:$0xff] }
 0x259   :  { %v171_v14 = vld [vmem:[#allocation11 + $0x50] sm:$0xff] }
 0x25a   :  { %5431 = vtanh.f32 %v485_v13  ;;  %v6082_v13 = vpack.c.bf16 %v156_v12, %v155_v11 }
 0x264   :  { %v5432_v16 = vpop.eup %5431 }
 0x265   :  { %3598 = vmatmul.mubr.f32.vlgmr.msra.gmra.mrb[2].mxu1 %v5432_v16  ;;  %v172_v16 = vld [vmem:[#allocation11 + $0x58] sm:$0xff] }
 0x266   :  { %4745 = vmatpush3.bf16.msra.mxu1 %v5855_v9  ;;  %3667 = vmatprep.mubr.msk.f32.mxu1 %vm5691_vm0, %v5692_v1 }
 0x267   :  { %4746 = vmatprep.subr.bf16.mxu1 %v5690_v0 }
 0x26a   :  { %4748 = vmatpush3.bf16.msra.mxu1 %v5858_v15 }
 0x26b   :  { %4749 = vmatprep.subr.bf16.mxu1 %v5690_v0 }
 0x26e   :  { %4751 = vmatpush3.bf16.msra.mxu1 %v5862_v21 }
 0x26f   :  { %4752 = vmatprep.subr.bf16.mxu1 %v5690_v0 }
 0x272   :  { %4754 = vmatpush3.bf16.msra.mxu1 %v5866_v28 }
 0x273   :  { %4755 = vmatprep.subr.bf16.mxu1 %v5690_v0 }
 0x276   :  { %4757 = vmatpush3.bf16.msra.mxu1 %v5870_v34 }
 0x277   :  { %4758 = vmatprep.subr.bf16.mxu1 %v5690_v0 }
 0x27a   :  { %4760 = vmatpush3.bf16.msra.mxu1 %v5874_v40 }
 0x27b   :  { %4761 = vmatprep.subr.bf16.mxu1 %v5690_v0 }
 0x27e   :  { %4763 = vmatpush3.bf16.msra.mxu1 %v5878_v46 }
 0x27f   :  { %4764 = vmatprep.subr.bf16.mxu1 %v5690_v0 }
 0x282   :  { %4766 = vmatpush3.bf16.msra.mxu1 %v5882_v50 }
 0x283   :  { %4791 = vmatprep.subr.bf16.mxu1 %v5690_v0 }
 0x338   :  { %v553_v18 = vpop.f32.mrb[2].mxu1 }
 0x339   :  { %v557_v19 = vadd.f32 %v553_v18, %v315_v17  ;;  %v3599_v20 = vpop.f32.mrb[3].mxu1  ;;  %v6084_v17 = vpack.c.bf16 %v172_v16, %v171_v14  ;;  %v157_v18 = vld [vmem:[#allocation10 + $0x60] sm:$0xff] }
 0x33a   :  { %v173_v20 = vld [vmem:[#allocation11 + $0x60] sm:$0xff] }
 0x33b   :  { %5433 = vtanh.f32 %v557_v19  ;;  %v158_v19 = vld [vmem:[#allocation10 + $0x68] sm:$0xff] }
 0x345   :  { %v5434_v22 = vpop.eup %5433 }
 0x346   :  { %3633 = vmatmul.mubr.f32.vlgmr.msra.gmra.mrb[10].mxu0 %v5434_v22  ;;  %v6090_v22 = vpack.c.bf16 %v158_v19, %v157_v18  ;;  %v6205_v18 = vld [vmem:[%s6655_s9] ss:$0 sm:$0xff] }
 0x347   :  { %4769 = vmatpush3.bf16.msra.mxu0 %v5855_v9  ;;  %3702 = vmatprep.mubr.msk.f32.mxu0 %vm5691_vm0, %v5692_v1 }
 0x348   :  { %4770 = vmatprep.subr.bf16.mxu0 %v5690_v0 }
 0x34b   :  { %4772 = vmatpush3.bf16.msra.mxu0 %v5858_v15 }
 0x34c   :  { %4773 = vmatprep.subr.bf16.mxu0 %v5690_v0 }
 0x34f   :  { %4775 = vmatpush3.bf16.msra.mxu0 %v5862_v21 }
 0x350   :  { %4776 = vmatprep.subr.bf16.mxu0 %v5690_v0 }
 0x353   :  { %4778 = vmatpush3.bf16.msra.mxu0 %v5866_v28 }
 0x354   :  { %4779 = vmatprep.subr.bf16.mxu0 %v5690_v0 }
 0x357   :  { %4781 = vmatpush3.bf16.msra.mxu0 %v5870_v34 }
 0x358   :  { %4782 = vmatprep.subr.bf16.mxu0 %v5690_v0 }
 0x35b   :  { %4784 = vmatpush3.bf16.msra.mxu0 %v5874_v40 }
 0x35c   :  { %4785 = vmatprep.subr.bf16.mxu0 %v5690_v0 }
 0x35f   :  { %4787 = vmatpush3.bf16.msra.mxu0 %v5878_v46 }
 0x360   :  { %4788 = vmatprep.subr.bf16.mxu0 %v5690_v0 }
 0x363   :  { %4790 = vmatpush3.bf16.msra.mxu0 %v5882_v50 }
 0x364   :  { %4815 = vmatprep.subr.bf16.mxu0 %v5690_v0 }
 0x419   :  { %v625_v24 = vpop.f32.mrb[10].mxu0 }
 0x41a   :  { %v629_v25 = vadd.f32 %v625_v24, %v320_v23  ;;  %v3634_v26 = vpop.f32.mrb[11].mxu0  ;;  %v174_v23 = vld [vmem:[#allocation11 + $0x68] sm:$0xff]  ;;  %v159_v24 = vld [vmem:[#allocation10 + $0x70] sm:$0xff] }
 0x41b   :  { %v6092_v26 = vpack.c.bf16 %v174_v23, %v173_v20 }
 0x41c   :  { %5435 = vtanh.f32 %v629_v25  ;;  %v160_v25 = vld [vmem:[#allocation10 + $0x78] sm:$0xff] }
 0x426   :  { %v5436_v27 = vpop.eup %5435 }
 0x427   :  { %3668 = vmatmul.mubr.f32.vlgmr.msra.gmra.mrb[4].mxu1 %v5436_v27  ;;  %v175_v27 = vld [vmem:[#allocation11 + $0x70] sm:$0xff] }
 0x428   :  { %4793 = vmatpush3.bf16.msra.mxu1 %v5855_v9  ;;  %3737 = vmatprep.mubr.msk.f32.mxu1 %vm5691_vm0, %v5692_v1 }
 0x429   :  { %4794 = vmatprep.subr.bf16.mxu1 %v5690_v0 }
 0x42c   :  { %4796 = vmatpush3.bf16.msra.mxu1 %v5858_v15 }
 0x42d   :  { %4797 = vmatprep.subr.bf16.mxu1 %v5690_v0 }
 0x430   :  { %4799 = vmatpush3.bf16.msra.mxu1 %v5862_v21 }
 0x431   :  { %4800 = vmatprep.subr.bf16.mxu1 %v5690_v0 }
 0x434   :  { %4802 = vmatpush3.bf16.msra.mxu1 %v5866_v28 }
 0x435   :  { %4803 = vmatprep.subr.bf16.mxu1 %v5690_v0 }
 0x438   :  { %4805 = vmatpush3.bf16.msra.mxu1 %v5870_v34 }
 0x439   :  { %4806 = vmatprep.subr.bf16.mxu1 %v5690_v0 }
 0x43c   :  { %4808 = vmatpush3.bf16.msra.mxu1 %v5874_v40 }
 0x43d   :  { %4809 = vmatprep.subr.bf16.mxu1 %v5690_v0 }
 0x440   :  { %4811 = vmatpush3.bf16.msra.mxu1 %v5878_v46 }
 0x441   :  { %4812 = vmatprep.subr.bf16.mxu1 %v5690_v0 }
 0x444   :  { %4814 = vmatpush3.bf16.msra.mxu1 %v5882_v50 }
 0x445   :  { %4839 = vmatprep.subr.bf16.mxu1 %v5690_v0 }
 0x4fa   :  { %v697_v30 = vpop.f32.mrb[4].mxu1 }
 0x4fb   :  { %v701_v31 = vadd.f32 %v697_v30, %v325_v29  ;;  %v3669_v32 = vpop.f32.mrb[5].mxu1  ;;  %v176_v29 = vld [vmem:[#allocation11 + $0x78] sm:$0xff]  ;;  %v6095_v30 = vpack.c.bf16 %v160_v25, %v159_v24 }
 0x4fc   :  { %v921_v32 = vld [vmem:[#allocation5] sm:$0xff] }
 0x4fd   :  { %5437 = vtanh.f32 %v701_v31  ;;  %v6099_v31 = vpack.c.bf16 %v176_v29, %v175_v27  ;;  %v919_v27 = vlaneseq }
 0x4ff   :  { %v6211_v29 = vand.u32 127, %v919_v27 }
 0x507   :  { %v5438_v33 = vpop.eup %5437 }
 0x508   :  { %3703 = vmatmul.mubr.f32.vlgmr.msra.gmra.mrb[12].mxu0 %v5438_v33  ;;  %v340_v33 = vadd.f32 %v5953_v8, %v5928_v58  ;;  %v182_v8 = vld [vmem:[#allocation13 + $0x28] sm:$0xff] }
 0x509   :  { %4817 = vmatpush3.bf16.msra.mxu0 %v5855_v9  ;;  %3772 = vmatprep.mubr.msk.f32.mxu0 %vm5691_vm0, %v5692_v1  ;;  %v330_v9 = vadd.f32 %v5949_v6, %v5928_v58  ;;  %v153_v6 = vld [vmem:[#allocation10 + $0x40] sm:$0xff] }
 0x50a   :  { %4818 = vmatprep.subr.bf16.mxu0 %v5690_v0 }
 0x50d   :  { %4820 = vmatpush3.bf16.msra.mxu0 %v5858_v15 }
 0x50e   :  { %4821 = vmatprep.subr.bf16.mxu0 %v5690_v0 }
 0x511   :  { %4823 = vmatpush3.bf16.msra.mxu0 %v5862_v21 }
 0x512   :  { %4824 = vmatprep.subr.bf16.mxu0 %v5690_v0 }
 0x515   :  { %4826 = vmatpush3.bf16.msra.mxu0 %v5866_v28 }
 0x516   :  { %4827 = vmatprep.subr.bf16.mxu0 %v5690_v0 }
 0x519   :  { %4829 = vmatpush3.bf16.msra.mxu0 %v5870_v34 }
 0x51a   :  { %4830 = vmatprep.subr.bf16.mxu0 %v5690_v0 }
 0x51d   :  { %4832 = vmatpush3.bf16.msra.mxu0 %v5874_v40  ;;  %v6042_v40 = vpack.c.bf16 %v164_v39, %v163_v38  ;;  %v180_v38 = vld [vmem:[#allocation13 + $0x18] sm:$0xff] }
 0x51e   :  { %4833 = vmatprep.subr.bf16.mxu0 %v5690_v0  ;;  %v6129_v41 = vpack.c.bf16 %v180_v38, %v179_v36 }
 0x521   :  { %4835 = vmatpush3.bf16.msra.mxu0 %v5878_v46  ;;  %v6050_v46 = vpack.c.bf16 %v168_v45, %v167_v44  ;;  %v183_v44 = vld [vmem:[#allocation13 + $0x30] sm:$0xff]  ;;  %v184_v45 = vld [vmem:[#allocation13 + $0x38] sm:$0xff] }
 0x522   :  { %4836 = vmatprep.subr.bf16.mxu0 %v5690_v0  ;;  %v6139_v47 = vpack.c.bf16 %v184_v45, %v183_v44  ;;  %v5693_v45 = vmov 1.0  }
 0x525   :  { %4838 = vmatpush3.bf16.msra.mxu0 %v5882_v50  ;;  %v335_v50 = vadd.f32 %v5928_v58, %v5955_v10  ;;  %v6077_v10 = vpack.c.bf16 %v154_v7, %v153_v6  ;;  %v181_v58 = vld [vmem:[#allocation13 + $0x20] sm:$0xff]  ;;  %v6163_v6 = vld [vmem:[%s6653_s7] ss:$0 sm:$0xff] }
 0x526   :  { %4863 = vmatprep.subr.bf16.mxu0 %v5690_v0  ;;  %v6135_v42 = vpack.c.bf16 %v182_v8, %v181_v58 }
 0x5db   :  { %v769_v15 = vpop.f32.mrb[12].mxu0 }
 0x5dc   :  { %v773_v21 = vadd.f32 %v769_v15, %v330_v9  ;;  %v3704_v28 = vpop.f32.mrb[13].mxu0 }
 0x5dd   :  { %v177_v28 = vld [vmem:[#allocation13] sm:$0xff] }
 0x5de   :  { %5439 = vtanh.f32 %v773_v21 }
 0x5e8   :  { %v5440_v34 = vpop.eup %5439 }
 0x5e9   :  { %3738 = vmatmul.mubr.f32.vlgmr.msra.gmra.mrb[6].mxu1 %v5440_v34  ;;  %v178_v34 = vld [vmem:[#allocation13 + $0x8] sm:$0xff] }
 0x5ea   :  { %3807 = vmatprep.mubr.msk.f32.mxu1 %vm5691_vm0, %v5692_v1  ;;  %4841 = vmatpush3.bf16.msra.mxu1 %v6038_v37  ;;  %v6126_v35 = vpack.c.bf16 %v178_v34, %v177_v28 }
 0x5eb   :  { %4842 = vmatprep.subr.bf16.mxu1 %v5690_v0 }
 0x5ee   :  { %4844 = vmatpush3.bf16.msra.mxu1 %v6042_v40 }
 0x5ef   :  { %4845 = vmatprep.subr.bf16.mxu1 %v5690_v0 }
 0x5f2   :  { %4847 = vmatpush3.bf16.msra.mxu1 %v6046_v43 }
 0x5f3   :  { %4848 = vmatprep.subr.bf16.mxu1 %v5690_v0 }
 0x5f6   :  { %4850 = vmatpush3.bf16.msra.mxu1 %v6050_v46 }
 0x5f7   :  { %4851 = vmatprep.subr.bf16.mxu1 %v5690_v0 }
 0x5fa   :  { %4853 = vmatpush3.bf16.msra.mxu1 %v6054_v49 }
 0x5fb   :  { %4854 = vmatprep.subr.bf16.mxu1 %v5690_v0 }
 0x5fe   :  { %4856 = vmatpush3.bf16.msra.mxu1 %v6084_v17 }
 0x5ff   :  { %4857 = vmatprep.subr.bf16.mxu1 %v5690_v0 }
 0x602   :  { %4859 = vmatpush3.bf16.msra.mxu1 %v6092_v26 }
 0x603   :  { %4860 = vmatprep.subr.bf16.mxu1 %v5690_v0 }
 0x606   :  { %4862 = vmatpush3.bf16.msra.mxu1 %v6099_v31 }
 0x607   :  { %4887 = vmatprep.subr.bf16.mxu1 %v5690_v0 }
 0x6bc   :  { %v841_v51 = vpop.f32.mrb[6].mxu1 }
 0x6bd   :  { %v845_v52 = vadd.f32 %v841_v51, %v335_v50  ;;  %v3739_v53 = vpop.f32.mrb[7].mxu1  ;;  %v186_v50 = vld [vmem:[#allocation13 + $0x48] sm:$0xff] }
 0x6bf   :  { %5441 = vtanh.f32 %v845_v52  ;;  %v6144_v52 = vpack.c.bf16 %v186_v50, %v185_v48 }
 0x6c9   :  { %v5442_v60 = vpop.eup %5441 }
 0x6ca   :  { %3773 = vmatmul.mubr.f32.vlgmr.msra.gmra.mrb[14].mxu0 %v5442_v60  ;;  %v190_v60 = vld [vmem:[#allocation13 + $0x68] sm:$0xff] }
 0x6cb   :  { %4865 = vmatpush3.bf16.msra.mxu0 %v6060_v56  ;;  %3842 = vmatprep.mubr.msk.f32.mxu0 %vm5691_vm0, %v5692_v1  ;;  %v6152_v62 = vpack.c.bf16 %v190_v60, %v189_v59 }
 0x6cc   :  { %4866 = vmatprep.subr.bf16.mxu0 %v5690_v0 }
 0x6cf   :  { %4868 = vmatpush3.bf16.msra.mxu0 %v6063_v61 }
 0x6d0   :  { %4869 = vmatprep.subr.bf16.mxu0 %v5690_v0 }
 0x6d3   :  { %4871 = vmatpush3.bf16.msra.mxu0 %v6069_v2 }
 0x6d4   :  { %4872 = vmatprep.subr.bf16.mxu0 %v5690_v0 }
 0x6d7   :  { %4874 = vmatpush3.bf16.msra.mxu0 %v6073_v5 }
 0x6d8   :  { %4875 = vmatprep.subr.bf16.mxu0 %v5690_v0 }
 0x6db   :  { %4877 = vmatpush3.bf16.msra.mxu0 %v6077_v10 }
 0x6dc   :  { %4878 = vmatprep.subr.bf16.mxu0 %v5690_v0 }
 0x6df   :  { %4880 = vmatpush3.bf16.msra.mxu0 %v6082_v13 }
 0x6e0   :  { %4881 = vmatprep.subr.bf16.mxu0 %v5690_v0 }
 0x6e3   :  { %4883 = vmatpush3.bf16.msra.mxu0 %v6090_v22 }
 0x6e4   :  { %4884 = vmatprep.subr.bf16.mxu0 %v5690_v0 }
 0x6e7   :  { %4886 = vmatpush3.bf16.msra.mxu0 %v6095_v30 }
 0x6e8   :  { %4911 = vmatprep.subr.bf16.mxu0 %v5690_v0 }
 0x6ea   :  { %3843 = vmatmul.mubr.f32.vlgmr.msra.gmra.mrb[16].mxu0 %v921_v32 }
 0x6eb   :  { %4913 = vmatpush3.bf16.msra.mxu0 %v6038_v37  ;;  %3912 = vmatprep.mubr.msk.f32.mxu0 %vm5691_vm0, %v5692_v1 }
 0x6ec   :  { %4914 = vmatprep.subr.bf16.mxu0 %v5690_v0 }
 0x6ef   :  { %4916 = vmatpush3.bf16.msra.mxu0 %v6042_v40 }
 0x6f0   :  { %4917 = vmatprep.subr.bf16.mxu0 %v5690_v0 }
 0x6f3   :  { %4919 = vmatpush3.bf16.msra.mxu0 %v6046_v43 }
 0x6f4   :  { %4920 = vmatprep.subr.bf16.mxu0 %v5690_v0 }
 0x6f7   :  { %4922 = vmatpush3.bf16.msra.mxu0 %v6050_v46 }
 0x6f8   :  { %4923 = vmatprep.subr.bf16.mxu0 %v5690_v0 }
 0x6fb   :  { %4925 = vmatpush3.bf16.msra.mxu0 %v6054_v49 }
 0x6fc   :  { %4926 = vmatprep.subr.bf16.mxu0 %v5690_v0 }
 0x6ff   :  { %4928 = vmatpush3.bf16.msra.mxu0 %v6084_v17 }
 0x700   :  { %4929 = vmatprep.subr.bf16.mxu0 %v5690_v0 }
 0x703   :  { %4931 = vmatpush3.bf16.msra.mxu0 %v6092_v26 }
 0x704   :  { %4932 = vmatprep.subr.bf16.mxu0 %v5690_v0 }
 0x707   :  { %4934 = vmatpush3.bf16.msra.mxu0 %v6099_v31 }
 0x708   :  { %4959 = vmatprep.subr.bf16.mxu0 %v5690_v0 }
 0x79d   :  { %v913_v9 = vpop.f32.mrb[14].mxu0 }
 0x79e   :  { %v917_v15 = vadd.f32 %v913_v9, %v340_v33  ;;  %v3774_v21 = vpop.f32.mrb[15].mxu0 }
 0x7a0   :  { %5443 = vtanh.f32 %v917_v15 }
 0x7aa   :  { %v5444_v39 = vpop.eup %5443 }
 0x7ab   :  { %3808 = vmatmul.mubr.f32.vlgmr.msra.gmra.mrb[8].mxu1 %v5444_v39 }
 0x7ac   :  { %4889 = vmatpush3.bf16.msra.mxu1 %v6126_v35  ;;  %3877 = vmatprep.mubr.msk.f32.mxu1 %vm5691_vm0, %v5692_v1 }
 0x7ad   :  { %4890 = vmatprep.subr.bf16.mxu1 %v5690_v0 }
 0x7b0   :  { %4892 = vmatpush3.bf16.msra.mxu1 %v6129_v41 }
 0x7b1   :  { %4893 = vmatprep.subr.bf16.mxu1 %v5690_v0 }
 0x7b4   :  { %4895 = vmatpush3.bf16.msra.mxu1 %v6135_v42 }
 0x7b5   :  { %4896 = vmatprep.subr.bf16.mxu1 %v5690_v0 }
 0x7b8   :  { %4898 = vmatpush3.bf16.msra.mxu1 %v6139_v47 }
 0x7b9   :  { %4899 = vmatprep.subr.bf16.mxu1 %v5690_v0 }
 0x7bc   :  { %4901 = vmatpush3.bf16.msra.mxu1 %v6144_v52 }
 0x7bd   :  { %v1058_v51 = vpop.f32.mrb[16].mxu0  ;;  %4902 = vmatprep.subr.bf16.mxu1 %v5690_v0 }
 0x7be   :  { %v3844_v53 = vpop.f32.mrb[17].mxu0 }
 0x7c0   :  { %4904 = vmatpush3.bf16.msra.mxu1 %v6148_v57 }
 0x7c1   :  { %4905 = vmatprep.subr.bf16.mxu1 %v5690_v0 }
 0x7c4   :  { %4907 = vmatpush3.bf16.msra.mxu1 %v6152_v62 }
 0x7c5   :  { %4908 = vmatprep.subr.bf16.mxu1 %v5690_v0 }
 0x7c8   :  { %4910 = vmatpush3.bf16.msra.mxu1 %v6155_v4 }
 0x7c9   :  { %4935 = vmatprep.subr.bf16.mxu1 %v5690_v0 }
 0x87e   :  { %v988_v7 = vpop.f32.mrb[8].mxu1 }
 0x87f   :  { %v1059_v11 = vadd.f32 %v1058_v51, %v988_v7  ;;  %v3809_v12 = vpop.f32.mrb[9].mxu1 }
 0x881   :  { %v1062_v14 = vadd.f32 %v6163_v6, %v1059_v11 }
 0x883   :  { %5445 = vtanh.f32 %v1062_v14 }
 0x88d   :  { %v5446_v16 = vpop.eup %5445 }
 0x88e   :  { %3878 = vmatmul.mubr.f32.vlgmr.msra.gmra.mrb[10].mxu1 %v5446_v16  ;;  %3913 = vmatmul.mubr.f32.vlgmr.msra.gmra.mrb[18].mxu0 %v5446_v16 }
 0x88f   :  { %4937 = vmatpush3.bf16.msra.mxu1 %v6060_v56  ;;  %3947 = vmatprep.mubr.msk.f32.mxu1 %vm5691_vm0, %v5692_v1 }
 0x890   :  { %4938 = vmatprep.subr.bf16.mxu1 %v5690_v0  ;;  %4961 = vmatpush3.bf16.msra.mxu0 %v6126_v35 }
 0x891   :  { %4962 = vmatprep.subr.bf16.mxu0 %v5690_v0  ;;  %3982 = vmatprep.mubr.msk.f32.mxu0 %vm5691_vm0, %v5692_v1 }
 0x893   :  { %4940 = vmatpush3.bf16.msra.mxu1 %v6063_v61 }
 0x894   :  { %4941 = vmatprep.subr.bf16.mxu1 %v5690_v0  ;;  %4964 = vmatpush3.bf16.msra.mxu0 %v6129_v41 }
 0x895   :  { %4965 = vmatprep.subr.bf16.mxu0 %v5690_v0 }
 0x897   :  { %4943 = vmatpush3.bf16.msra.mxu1 %v6069_v2 }
 0x898   :  { %4944 = vmatprep.subr.bf16.mxu1 %v5690_v0  ;;  %4967 = vmatpush3.bf16.msra.mxu0 %v6135_v42 }
 0x899   :  { %4968 = vmatprep.subr.bf16.mxu0 %v5690_v0 }
 0x89b   :  { %4946 = vmatpush3.bf16.msra.mxu1 %v6073_v5 }
 0x89c   :  { %4947 = vmatprep.subr.bf16.mxu1 %v5690_v0  ;;  %4970 = vmatpush3.bf16.msra.mxu0 %v6139_v47 }
 0x89d   :  { %4971 = vmatprep.subr.bf16.mxu0 %v5690_v0 }
 0x89f   :  { %4949 = vmatpush3.bf16.msra.mxu1 %v6077_v10 }
 0x8a0   :  { %4950 = vmatprep.subr.bf16.mxu1 %v5690_v0  ;;  %4973 = vmatpush3.bf16.msra.mxu0 %v6144_v52 }
 0x8a1   :  { %4974 = vmatprep.subr.bf16.mxu0 %v5690_v0 }
 0x8a3   :  { %4952 = vmatpush3.bf16.msra.mxu1 %v6082_v13 }
 0x8a4   :  { %4953 = vmatprep.subr.bf16.mxu1 %v5690_v0  ;;  %4976 = vmatpush3.bf16.msra.mxu0 %v6148_v57 }
 0x8a5   :  { %4977 = vmatprep.subr.bf16.mxu0 %v5690_v0 }
 0x8a7   :  { %4955 = vmatpush3.bf16.msra.mxu1 %v6090_v22 }
 0x8a8   :  { %4956 = vmatprep.subr.bf16.mxu1 %v5690_v0  ;;  %4979 = vmatpush3.bf16.msra.mxu0 %v6152_v62 }
 0x8a9   :  { %4980 = vmatprep.subr.bf16.mxu0 %v5690_v0 }
 0x8ab   :  { %4958 = vmatpush3.bf16.msra.mxu1 %v6095_v30 }
 0x8ac   :  { %4983 = vmatprep.subr.bf16.mxu1 %v5690_v0  ;;  %4982 = vmatpush3.bf16.msra.mxu0 %v6155_v4 }
 0x8ad   :  { %5007 = vmatprep.subr.bf16.mxu0 %v5690_v0 }
 0x961   :  { %v1130_v19 = vpop.f32.mrb[10].mxu1  ;;  %v1230_v20 = vpop.f32.mrb[18].mxu0 }
 0x962   :  { %v6208_v23 = vadd.f32 %v6205_v18, %v1130_v19  ;;  %v3879_v24 = vpop.f32.mrb[11].mxu1  ;;  %v3914_v25 = vpop.f32.mrb[19].mxu0 }
 0x964   :  { %1134 = vmax.xlane.f32.xlu0 %v6208_v23 }
 0x9f1   :  { %v6213_v32 = vpop.xlane.xlu0 %1134 }
 0x9f2   :  { %vm1145_vm1 = vcmp.eq.f32.partialorder %v6208_v23, %v6213_v32 }
 0x9f3   :  { %v1146_v33 = vsel %vm1145_vm1, %v6211_v29, 128 }
 0x9f4   :  { %v1148_v9 = vshra.s32 %v1146_v33, 16  ;;  %v1147_v21 = vand.u32 65535, %v1146_v33 }
 0x9f6   :  { %v1150_v15 = vcvt.s32.f32 %v1148_v9  ;;  %v1149_v34 = vcvt.s32.f32 %v1147_v21 }
 0x9f8   :  { %1151 = vmin.xlane.f32.xlu0 %v1150_v15 }
 0xa85   :  { %v1152_v28 = vpop.xlane.xlu0 %1151 }
 0xa86   :  { %vm1153_vm2 = vcmp.eq.f32.partialorder %v1150_v15, %v1152_v28  ;;  %v1158_v38 = vcvt.f32.s32 %v1152_v28 }
 0xa87   :  { %v1154_v36 = vsel %vm1153_vm2, %v1149_v34, inf }
 0xa88   :  { %1155 = vmin.xlane.f32.xlu1 %v1154_v36  ;;  %v1159_v58 = vshll.u32 %v1158_v38, 16 }
 0xb15   :  { %v1156_v39 = vpop.xlane.xlu1 %1155 }
 0xb16   :  { %v1157_v8 = vcvt.f32.s32 %v1156_v39 }
 0xb18   :  { %v1160_v44 = vadd.s32 %v1159_v58, %v1157_v8 }
 0xb1a   :  { %vm1161_vm3 = vcmp.eq.s32.totalorder %v6211_v29, %v1160_v44 }
 0xb1b   :  { %3948 = vmatmul.mubr.msk.f32.vlgmr.msra.gmra.mrb[12].mxu1 %vm1161_vm3, %v5693_v45 }
 0xb1c   :  { %4985 = vmatpush3.bf16.msra.mxu1 %v6038_v37  ;;  %4017 = vmatprep.mubr.msk.f32.mxu1 %vm5691_vm0, %v5692_v1 }
 0xb1d   :  { %4986 = vmatprep.subr.bf16.mxu1 %v5690_v0 }
 0xb20   :  { %4988 = vmatpush3.bf16.msra.mxu1 %v6042_v40 }
 0xb21   :  { %4989 = vmatprep.subr.bf16.mxu1 %v5690_v0 }
 0xb24   :  { %4991 = vmatpush3.bf16.msra.mxu1 %v6046_v43 }
 0xb25   :  { %4992 = vmatprep.subr.bf16.mxu1 %v5690_v0 }
 0xb28   :  { %4994 = vmatpush3.bf16.msra.mxu1 %v6050_v46 }
 0xb29   :  { %4995 = vmatprep.subr.bf16.mxu1 %v5690_v0 }
 0xb2c   :  { %4997 = vmatpush3.bf16.msra.mxu1 %v6054_v49 }
 0xb2d   :  { %4998 = vmatprep.subr.bf16.mxu1 %v5690_v0 }
 0xb30   :  { %5000 = vmatpush3.bf16.msra.mxu1 %v6084_v17 }
 0xb31   :  { %5001 = vmatprep.subr.bf16.mxu1 %v5690_v0 }
 0xb34   :  { %5003 = vmatpush3.bf16.msra.mxu1 %v6092_v26 }
 0xb35   :  { %5004 = vmatprep.subr.bf16.mxu1 %v5690_v0 }
 0xb38   :  { %5006 = vmatpush3.bf16.msra.mxu1 %v6099_v31 }
 0xb39   :  { %5031 = vmatprep.subr.bf16.mxu1 %v5690_v0 }
 0xbee   :  { %v1300_v48 = vpop.f32.mrb[12].mxu1 }
 0xbef   :  { %v1301_v50 = vadd.f32 %v1300_v48, %v1230_v20  ;;  %v3949_v51 = vpop.f32.mrb[13].mxu1 }
 0xbf1   :  { %v1304_v53 = vadd.f32 %v6163_v6, %v1301_v50 }
 0xbf3   :  { %5447 = vtanh.f32 %v1304_v53 }
 0xbfd   :  { %v5448_v54 = vpop.eup %5447 }
 0xbfe   :  { %3983 = vmatmul.mubr.f32.vlgmr.msra.gmra.mrb[20].mxu0 %v5448_v54  ;;  %4018 = vmatmul.mubr.f32.vlgmr.msra.gmra.mrb[14].mxu1 %v5448_v54 }
 0xbff   :  { %5009 = vmatpush3.bf16.msra.mxu0 %v6060_v56  ;;  %4052 = vmatprep.mubr.msk.f32.mxu0 %vm5691_vm0, %v5692_v1 }
 0xc00   :  { %5010 = vmatprep.subr.bf16.mxu0 %v5690_v0  ;;  %5033 = vmatpush3.bf16.msra.mxu1 %v6126_v35 }
 0xc01   :  { %5034 = vmatprep.subr.bf16.mxu1 %v5690_v0  ;;  %4087 = vmatprep.mubr.msk.f32.mxu1 %vm5691_vm0, %v5692_v1 }
 0xc03   :  { %5012 = vmatpush3.bf16.msra.mxu0 %v6063_v61 }
 0xc04   :  { %5013 = vmatprep.subr.bf16.mxu0 %v5690_v0  ;;  %5036 = vmatpush3.bf16.msra.mxu1 %v6129_v41 }
 0xc05   :  { %5037 = vmatprep.subr.bf16.mxu1 %v5690_v0 }
 0xc07   :  { %5015 = vmatpush3.bf16.msra.mxu0 %v6069_v2 }
 0xc08   :  { %5016 = vmatprep.subr.bf16.mxu0 %v5690_v0  ;;  %5039 = vmatpush3.bf16.msra.mxu1 %v6135_v42 }
 0xc09   :  { %5040 = vmatprep.subr.bf16.mxu1 %v5690_v0 }
 0xc0b   :  { %5018 = vmatpush3.bf16.msra.mxu0 %v6073_v5 }
 0xc0c   :  { %5019 = vmatprep.subr.bf16.mxu0 %v5690_v0  ;;  %5042 = vmatpush3.bf16.msra.mxu1 %v6139_v47 }
 0xc0d   :  { %5043 = vmatprep.subr.bf16.mxu1 %v5690_v0 }
 0xc0f   :  { %5021 = vmatpush3.bf16.msra.mxu0 %v6077_v10 }
 0xc10   :  { %5022 = vmatprep.subr.bf16.mxu0 %v5690_v0  ;;  %5045 = vmatpush3.bf16.msra.mxu1 %v6144_v52 }
 0xc11   :  { %5046 = vmatprep.subr.bf16.mxu1 %v5690_v0 }
 0xc13   :  { %5024 = vmatpush3.bf16.msra.mxu0 %v6082_v13 }
 0xc14   :  { %5025 = vmatprep.subr.bf16.mxu0 %v5690_v0  ;;  %5048 = vmatpush3.bf16.msra.mxu1 %v6148_v57 }
 0xc15   :  { %5049 = vmatprep.subr.bf16.mxu1 %v5690_v0 }
 0xc17   :  { %5027 = vmatpush3.bf16.msra.mxu0 %v6090_v22 }
 0xc18   :  { %5028 = vmatprep.subr.bf16.mxu0 %v5690_v0  ;;  %5051 = vmatpush3.bf16.msra.mxu1 %v6152_v62 }
 0xc19   :  { %5052 = vmatprep.subr.bf16.mxu1 %v5690_v0 }
 0xc1b   :  { %5030 = vmatpush3.bf16.msra.mxu0 %v6095_v30 }
 0xc1c   :  { %5055 = vmatprep.subr.bf16.mxu0 %v5690_v0  ;;  %5054 = vmatpush3.bf16.msra.mxu1 %v6155_v4 }
 0xc1d   :  { %5079 = vmatprep.subr.bf16.mxu1 %v5690_v0 }
 0xcd1   :  { %v1372_v55 = vpop.f32.mrb[20].mxu0  ;;  %v1473_v59 = vpop.f32.mrb[14].mxu1 }
 0xcd2   :  { %v6276_v60 = vadd.f32 %v6205_v18, %v1372_v55  ;;  %v3984_v63 = vpop.f32.mrb[21].mxu0  ;;  %v4019_v3 = vpop.f32.mrb[15].mxu1 }
 0xcd4   :  { %1376 = vmax.xlane.f32.xlu1 %v6276_v60 }
 0xd61   :  { %v6279_v7 = vpop.xlane.xlu1 %1376 }
 0xd62   :  { %vm1388_vm4 = vcmp.eq.f32.partialorder %v6276_v60, %v6279_v7 }
 0xd63   :  { %v1389_v11 = vsel %vm1388_vm4, %v6211_v29, 128 }
 0xd64   :  { %v1391_v12 = vshra.s32 %v1389_v11, 16  ;;  %v1390_v16 = vand.u32 65535, %v1389_v11 }
 0xd66   :  { %v1393_v14 = vcvt.s32.f32 %v1391_v12  ;;  %v1392_v20 = vcvt.s32.f32 %v1390_v16 }
 0xd68   :  { %1394 = vmin.xlane.f32.xlu0 %v1393_v14 }
 0xdf5   :  { %v1395_v19 = vpop.xlane.xlu0 %1394 }
 0xdf6   :  { %vm1396_vm5 = vcmp.eq.f32.partialorder %v1393_v14, %v1395_v19  ;;  %v1401_v25 = vcvt.f32.s32 %v1395_v19 }
 0xdf7   :  { %v1397_v24 = vsel %vm1396_vm5, %v1392_v20, inf }
 0xdf8   :  { %1398 = vmin.xlane.f32.xlu1 %v1397_v24  ;;  %v1402_v33 = vshll.u32 %v1401_v25, 16 }
 0xe85   :  { %v1399_v27 = vpop.xlane.xlu1 %1398 }
 0xe86   :  { %v1400_v9 = vcvt.f32.s32 %v1399_v27 }
 0xe88   :  { %v1403_v15 = vadd.s32 %v1402_v33, %v1400_v9 }
 0xe8a   :  { %vm1404_vm6 = vcmp.eq.s32.totalorder %v6211_v29, %v1403_v15 }
 0xe8b   :  { %4053 = vmatmul.mubr.msk.f32.vlgmr.msra.gmra.mrb[22].mxu0 %vm1404_vm6, %v5693_v45 }
 0xe8c   :  { %5057 = vmatpush3.bf16.msra.mxu0 %v6038_v37  ;;  %4122 = vmatprep.mubr.msk.f32.mxu0 %vm5691_vm0, %v5692_v1 }
 0xe8d   :  { %5058 = vmatprep.subr.bf16.mxu0 %v5690_v0 }
 0xe90   :  { %5060 = vmatpush3.bf16.msra.mxu0 %v6042_v40 }
 0xe91   :  { %5061 = vmatprep.subr.bf16.mxu0 %v5690_v0 }
 0xe94   :  { %5063 = vmatpush3.bf16.msra.mxu0 %v6046_v43 }
 0xe95   :  { %5064 = vmatprep.subr.bf16.mxu0 %v5690_v0 }
 0xe98   :  { %5066 = vmatpush3.bf16.msra.mxu0 %v6050_v46 }
 0xe99   :  { %5067 = vmatprep.subr.bf16.mxu0 %v5690_v0 }
 0xe9c   :  { %5069 = vmatpush3.bf16.msra.mxu0 %v6054_v49 }
 0xe9d   :  { %5070 = vmatprep.subr.bf16.mxu0 %v5690_v0 }
 0xea0   :  { %5072 = vmatpush3.bf16.msra.mxu0 %v6084_v17 }
 0xea1   :  { %5073 = vmatprep.subr.bf16.mxu0 %v5690_v0 }
 0xea4   :  { %5075 = vmatpush3.bf16.msra.mxu0 %v6092_v26 }
 0xea5   :  { %5076 = vmatprep.subr.bf16.mxu0 %v5690_v0 }
 0xea8   :  { %5078 = vmatpush3.bf16.msra.mxu0 %v6099_v31 }
 0xea9   :  { %5103 = vmatprep.subr.bf16.mxu0 %v5690_v0 }
 0xf5e   :  { %v1543_v21 = vpop.f32.mrb[22].mxu0 }
 0xf5f   :  { %v1544_v28 = vadd.f32 %v1543_v21, %v1473_v59  ;;  %v4054_v34 = vpop.f32.mrb[23].mxu0 }
 0xf61   :  { %v1547_v36 = vadd.f32 %v6163_v6, %v1544_v28 }
 0xf63   :  { %5449 = vtanh.f32 %v1547_v36 }
 0xf6d   :  { %v5450_v38 = vpop.eup %5449 }
 0xf6e   :  { %4088 = vmatmul.mubr.f32.vlgmr.msra.gmra.mrb[16].mxu1 %v5450_v38  ;;  %4123 = vmatmul.mubr.f32.vlgmr.msra.gmra.mrb[24].mxu0 %v5450_v38 }
 0xf6f   :  { %5081 = vmatpush3.bf16.msra.mxu1 %v6060_v56  ;;  %4157 = vmatprep.mubr.msk.f32.mxu1 %vm5691_vm0, %v5692_v1 }
 0xf70   :  { %5082 = vmatprep.subr.bf16.mxu1 %v5690_v0  ;;  %5105 = vmatpush3.bf16.msra.mxu0 %v6126_v35 }
 0xf71   :  { %5106 = vmatprep.subr.bf16.mxu0 %v5690_v0  ;;  %4192 = vmatprep.mubr.msk.f32.mxu0 %vm5691_vm0, %v5692_v1 }
 0xf73   :  { %5084 = vmatpush3.bf16.msra.mxu1 %v6063_v61 }
 0xf74   :  { %5085 = vmatprep.subr.bf16.mxu1 %v5690_v0  ;;  %5108 = vmatpush3.bf16.msra.mxu0 %v6129_v41 }
 0xf75   :  { %5109 = vmatprep.subr.bf16.mxu0 %v5690_v0 }
 0xf77   :  { %5087 = vmatpush3.bf16.msra.mxu1 %v6069_v2 }
 0xf78   :  { %5088 = vmatprep.subr.bf16.mxu1 %v5690_v0  ;;  %5111 = vmatpush3.bf16.msra.mxu0 %v6135_v42 }
 0xf79   :  { %5112 = vmatprep.subr.bf16.mxu0 %v5690_v0 }
 0xf7b   :  { %5090 = vmatpush3.bf16.msra.mxu1 %v6073_v5 }
 0xf7c   :  { %5091 = vmatprep.subr.bf16.mxu1 %v5690_v0  ;;  %5114 = vmatpush3.bf16.msra.mxu0 %v6139_v47 }
 0xf7d   :  { %5115 = vmatprep.subr.bf16.mxu0 %v5690_v0 }
 0xf7f   :  { %5093 = vmatpush3.bf16.msra.mxu1 %v6077_v10 }
 0xf80   :  { %5094 = vmatprep.subr.bf16.mxu1 %v5690_v0  ;;  %5117 = vmatpush3.bf16.msra.mxu0 %v6144_v52 }
 0xf81   :  { %5118 = vmatprep.subr.bf16.mxu0 %v5690_v0 }
 0xf83   :  { %5096 = vmatpush3.bf16.msra.mxu1 %v6082_v13 }
 0xf84   :  { %5097 = vmatprep.subr.bf16.mxu1 %v5690_v0  ;;  %5120 = vmatpush3.bf16.msra.mxu0 %v6148_v57 }
 0xf85   :  { %5121 = vmatprep.subr.bf16.mxu0 %v5690_v0 }
 0xf87   :  { %5099 = vmatpush3.bf16.msra.mxu1 %v6090_v22 }
 0xf88   :  { %5100 = vmatprep.subr.bf16.mxu1 %v5690_v0  ;;  %5123 = vmatpush3.bf16.msra.mxu0 %v6152_v62 }
 0xf89   :  { %5124 = vmatprep.subr.bf16.mxu0 %v5690_v0 }
 0xf8b   :  { %5102 = vmatpush3.bf16.msra.mxu1 %v6095_v30 }
 0xf8c   :  { %5127 = vmatprep.subr.bf16.mxu1 %v5690_v0  ;;  %5126 = vmatpush3.bf16.msra.mxu0 %v6155_v4 }
 0xf8d   :  { %5151 = vmatprep.subr.bf16.mxu0 %v5690_v0 }
0x1041   :  { %v1615_v39 = vpop.f32.mrb[16].mxu1  ;;  %v1716_v58 = vpop.f32.mrb[24].mxu0 }
0x1042   :  { %v6342_v8 = vadd.f32 %v6205_v18, %v1615_v39  ;;  %v4089_v44 = vpop.f32.mrb[17].mxu1  ;;  %v4124_v48 = vpop.f32.mrb[25].mxu0 }
0x1044   :  { %1619 = vmax.xlane.f32.xlu0 %v6342_v8 }
0x10d1   :  { %v6345_v50 = vpop.xlane.xlu0 %1619 }
0x10d2   :  { %vm1631_vm7 = vcmp.eq.f32.partialorder %v6342_v8, %v6345_v50 }
0x10d3   :  { %v1632_v51 = vsel %vm1631_vm7, %v6211_v29, 128 }
0x10d4   :  { %v1634_v53 = vshra.s32 %v1632_v51, 16  ;;  %v1633_v55 = vand.u32 65535, %v1632_v51 }
0x10d6   :  { %v1636_v54 = vcvt.s32.f32 %v1634_v53  ;;  %v1635_v63 = vcvt.s32.f32 %v1633_v55 }
0x10d8   :  { %1637 = vmin.xlane.f32.xlu1 %v1636_v54 }
0x1165   :  { %v1638_v59 = vpop.xlane.xlu1 %1637 }
0x1166   :  { %vm1639_vm8 = vcmp.eq.f32.partialorder %v1636_v54, %v1638_v59  ;;  %v1644_v11 = vcvt.f32.s32 %v1638_v59 }
0x1167   :  { %v1640_v3 = vsel %vm1639_vm8, %v1635_v63, inf }
0x1168   :  { %1641 = vmin.xlane.f32.xlu0 %v1640_v3  ;;  %v1645_v14 = vshll.u32 %v1644_v11, 16 }
0x11f5   :  { %v1642_v12 = vpop.xlane.xlu0 %1641 }
0x11f6   :  { %v1643_v16 = vcvt.f32.s32 %v1642_v12 }
0x11f8   :  { %v1646_v19 = vadd.s32 %v1645_v14, %v1643_v16 }
0x11fa   :  { %vm1647_vm9 = vcmp.eq.s32.totalorder %v6211_v29, %v1646_v19 }
0x11fb   :  { %4158 = vmatmul.mubr.msk.f32.vlgmr.msra.gmra.mrb[18].mxu1 %vm1647_vm9, %v5693_v45 }
0x11fc   :  { %5129 = vmatpush3.bf16.msra.mxu1 %v6038_v37  ;;  %4227 = vmatprep.mubr.msk.f32.mxu1 %vm5691_vm0, %v5692_v1 }
0x11fd   :  { %5130 = vmatprep.subr.bf16.mxu1 %v5690_v0 }
0x1200   :  { %5132 = vmatpush3.bf16.msra.mxu1 %v6042_v40 }
0x1201   :  { %5133 = vmatprep.subr.bf16.mxu1 %v5690_v0 }
0x1204   :  { %5135 = vmatpush3.bf16.msra.mxu1 %v6046_v43 }
0x1205   :  { %5136 = vmatprep.subr.bf16.mxu1 %v5690_v0 }
0x1208   :  { %5138 = vmatpush3.bf16.msra.mxu1 %v6050_v46 }
0x1209   :  { %5139 = vmatprep.subr.bf16.mxu1 %v5690_v0 }
0x120c   :  { %5141 = vmatpush3.bf16.msra.mxu1 %v6054_v49 }
0x120d   :  { %5142 = vmatprep.subr.bf16.mxu1 %v5690_v0 }
0x1210   :  { %5144 = vmatpush3.bf16.msra.mxu1 %v6084_v17 }
0x1211   :  { %5145 = vmatprep.subr.bf16.mxu1 %v5690_v0 }
0x1214   :  { %5147 = vmatpush3.bf16.msra.mxu1 %v6092_v26 }
0x1215   :  { %5148 = vmatprep.subr.bf16.mxu1 %v5690_v0 }
0x1218   :  { %5150 = vmatpush3.bf16.msra.mxu1 %v6099_v31 }
0x1219   :  { %5175 = vmatprep.subr.bf16.mxu1 %v5690_v0 }
0x12ce   :  { %v1786_v20 = vpop.f32.mrb[18].mxu1 }
0x12cf   :  { %v1787_v24 = vadd.f32 %v1786_v20, %v1716_v58  ;;  %v4159_v25 = vpop.f32.mrb[19].mxu1 }
0x12d1   :  { %v1790_v27 = vadd.f32 %v6163_v6, %v1787_v24 }
0x12d3   :  { %5451 = vtanh.f32 %v1790_v27 }
0x12dd   :  { %v5452_v33 = vpop.eup %5451 }
0x12de   :  { %4193 = vmatmul.mubr.f32.vlgmr.msra.gmra.mrb[26].mxu0 %v5452_v33  ;;  %4228 = vmatmul.mubr.f32.vlgmr.msra.gmra.mrb[20].mxu1 %v5452_v33 }
0x12df   :  { %5153 = vmatpush3.bf16.msra.mxu0 %v6060_v56  ;;  %4262 = vmatprep.mubr.msk.f32.mxu0 %vm5691_vm0, %v5692_v1 }
0x12e0   :  { %5154 = vmatprep.subr.bf16.mxu0 %v5690_v0  ;;  %5177 = vmatpush3.bf16.msra.mxu1 %v6126_v35 }
0x12e1   :  { %5178 = vmatprep.subr.bf16.mxu1 %v5690_v0  ;;  %4297 = vmatprep.mubr.msk.f32.mxu1 %vm5691_vm0, %v5692_v1 }
0x12e3   :  { %5156 = vmatpush3.bf16.msra.mxu0 %v6063_v61 }
0x12e4   :  { %5157 = vmatprep.subr.bf16.mxu0 %v5690_v0  ;;  %5180 = vmatpush3.bf16.msra.mxu1 %v6129_v41 }
0x12e5   :  { %5181 = vmatprep.subr.bf16.mxu1 %v5690_v0 }
0x12e7   :  { %5159 = vmatpush3.bf16.msra.mxu0 %v6069_v2 }
0x12e8   :  { %5160 = vmatprep.subr.bf16.mxu0 %v5690_v0  ;;  %5183 = vmatpush3.bf16.msra.mxu1 %v6135_v42 }
0x12e9   :  { %5184 = vmatprep.subr.bf16.mxu1 %v5690_v0 }
0x12eb   :  { %5162 = vmatpush3.bf16.msra.mxu0 %v6073_v5 }
0x12ec   :  { %5163 = vmatprep.subr.bf16.mxu0 %v5690_v0  ;;  %5186 = vmatpush3.bf16.msra.mxu1 %v6139_v47 }
0x12ed   :  { %5187 = vmatprep.subr.bf16.mxu1 %v5690_v0 }
0x12ef   :  { %5165 = vmatpush3.bf16.msra.mxu0 %v6077_v10 }
0x12f0   :  { %5166 = vmatprep.subr.bf16.mxu0 %v5690_v0  ;;  %5189 = vmatpush3.bf16.msra.mxu1 %v6144_v52 }
0x12f1   :  { %5190 = vmatprep.subr.bf16.mxu1 %v5690_v0 }
0x12f3   :  { %5168 = vmatpush3.bf16.msra.mxu0 %v6082_v13 }
0x12f4   :  { %5169 = vmatprep.subr.bf16.mxu0 %v5690_v0  ;;  %5192 = vmatpush3.bf16.msra.mxu1 %v6148_v57 }
0x12f5   :  { %5193 = vmatprep.subr.bf16.mxu1 %v5690_v0 }
0x12f7   :  { %5171 = vmatpush3.bf16.msra.mxu0 %v6090_v22 }
0x12f8   :  { %5172 = vmatprep.subr.bf16.mxu0 %v5690_v0  ;;  %5195 = vmatpush3.bf16.msra.mxu1 %v6152_v62 }
0x12f9   :  { %5196 = vmatprep.subr.bf16.mxu1 %v5690_v0 }
0x12fb   :  { %5174 = vmatpush3.bf16.msra.mxu0 %v6095_v30 }
0x12fc   :  { %5199 = vmatprep.subr.bf16.mxu0 %v5690_v0  ;;  %5198 = vmatpush3.bf16.msra.mxu1 %v6155_v4 }
0x12fd   :  { %5223 = vmatprep.subr.bf16.mxu1 %v5690_v0 }
0x13b1   :  { %v1858_v9 = vpop.f32.mrb[26].mxu0  ;;  %v1959_v15 = vpop.f32.mrb[20].mxu1 }
0x13b2   :  { %v6408_v21 = vadd.f32 %v6205_v18, %v1858_v9  ;;  %v4194_v28 = vpop.f32.mrb[27].mxu0  ;;  %v4229_v34 = vpop.f32.mrb[21].mxu1 }
0x13b4   :  { %1862 = vmax.xlane.f32.xlu1 %v6408_v21 }
0x1441   :  { %v6411_v36 = vpop.xlane.xlu1 %1862 }
0x1442   :  { %vm1874_vm10 = vcmp.eq.f32.partialorder %v6408_v21, %v6411_v36 }
0x1443   :  { %v1875_v38 = vsel %vm1874_vm10, %v6211_v29, 128 }
0x1444   :  { %v1877_v39 = vshra.s32 %v1875_v38, 16  ;;  %v1876_v44 = vand.u32 65535, %v1875_v38 }
0x1446   :  { %v1879_v58 = vcvt.s32.f32 %v1877_v39  ;;  %v1878_v51 = vcvt.s32.f32 %v1876_v44 }
0x1448   :  { %1880 = vmin.xlane.f32.xlu0 %v1879_v58 }
0x14d5   :  { %v1881_v48 = vpop.xlane.xlu0 %1880 }
0x14d6   :  { %vm1882_vm11 = vcmp.eq.f32.partialorder %v1879_v58, %v1881_v48  ;;  %v1887_v54 = vcvt.f32.s32 %v1881_v48 }
0x14d7   :  { %v1883_v53 = vsel %vm1882_vm11, %v1878_v51, inf }
0x14d8   :  { %1884 = vmin.xlane.f32.xlu1 %v1883_v53  ;;  %v1888_v59 = vshll.u32 %v1887_v54, 16 }
0x1565   :  { %v1885_v55 = vpop.xlane.xlu1 %1884 }
0x1566   :  { %v1886_v63 = vcvt.f32.s32 %v1885_v55 }
0x1568   :  { %v1889_v3 = vadd.s32 %v1888_v59, %v1886_v63 }
0x156a   :  { %vm1890_vm12 = vcmp.eq.s32.totalorder %v6211_v29, %v1889_v3 }
0x156b   :  { %4263 = vmatmul.mubr.msk.f32.vlgmr.msra.gmra.mrb[28].mxu0 %vm1890_vm12, %v5693_v45 }
0x156c   :  { %5201 = vmatpush3.bf16.msra.mxu0 %v6038_v37  ;;  %4332 = vmatprep.mubr.msk.f32.mxu0 %vm5691_vm0, %v5692_v1 }
0x156d   :  { %5202 = vmatprep.subr.bf16.mxu0 %v5690_v0 }
0x1570   :  { %5204 = vmatpush3.bf16.msra.mxu0 %v6042_v40 }
0x1571   :  { %5205 = vmatprep.subr.bf16.mxu0 %v5690_v0 }
0x1574   :  { %5207 = vmatpush3.bf16.msra.mxu0 %v6046_v43 }
0x1575   :  { %5208 = vmatprep.subr.bf16.mxu0 %v5690_v0 }
0x1578   :  { %5210 = vmatpush3.bf16.msra.mxu0 %v6050_v46 }
0x1579   :  { %5211 = vmatprep.subr.bf16.mxu0 %v5690_v0 }
0x157c   :  { %5213 = vmatpush3.bf16.msra.mxu0 %v6054_v49 }
0x157d   :  { %5214 = vmatprep.subr.bf16.mxu0 %v5690_v0 }
0x1580   :  { %5216 = vmatpush3.bf16.msra.mxu0 %v6084_v17 }
0x1581   :  { %5217 = vmatprep.subr.bf16.mxu0 %v5690_v0 }
0x1584   :  { %5219 = vmatpush3.bf16.msra.mxu0 %v6092_v26 }
0x1585   :  { %5220 = vmatprep.subr.bf16.mxu0 %v5690_v0 }
0x1588   :  { %5222 = vmatpush3.bf16.msra.mxu0 %v6099_v31 }
0x1589   :  { %5247 = vmatprep.subr.bf16.mxu0 %v5690_v0 }
0x163e   :  { %v2029_v11 = vpop.f32.mrb[28].mxu0 }
0x163f   :  { %v2030_v12 = vadd.f32 %v2029_v11, %v1959_v15  ;;  %v4264_v14 = vpop.f32.mrb[29].mxu0 }
0x1641   :  { %v2033_v16 = vadd.f32 %v6163_v6, %v2030_v12 }
0x1643   :  { %5453 = vtanh.f32 %v2033_v16 }
0x164d   :  { %v5454_v19 = vpop.eup %5453 }
0x164e   :  { %4298 = vmatmul.mubr.f32.vlgmr.msra.gmra.mrb[22].mxu1 %v5454_v19  ;;  %4333 = vmatmul.mubr.f32.vlgmr.msra.gmra.mrb[30].mxu0 %v5454_v19 }
0x164f   :  { %5225 = vmatpush3.bf16.msra.mxu1 %v6060_v56  ;;  %4367 = vmatprep.mubr.msk.f32.mxu1 %vm5691_vm0, %v5692_v1 }
0x1650   :  { %5226 = vmatprep.subr.bf16.mxu1 %v5690_v0  ;;  %5249 = vmatpush3.bf16.msra.mxu0 %v6126_v35 }
0x1651   :  { %5250 = vmatprep.subr.bf16.mxu0 %v5690_v0  ;;  %4402 = vmatprep.mubr.msk.f32.mxu0 %vm5691_vm0, %v5692_v1 }
0x1653   :  { %5228 = vmatpush3.bf16.msra.mxu1 %v6063_v61 }
0x1654   :  { %5229 = vmatprep.subr.bf16.mxu1 %v5690_v0  ;;  %5252 = vmatpush3.bf16.msra.mxu0 %v6129_v41 }
0x1655   :  { %5253 = vmatprep.subr.bf16.mxu0 %v5690_v0 }
0x1657   :  { %5231 = vmatpush3.bf16.msra.mxu1 %v6069_v2 }
0x1658   :  { %5232 = vmatprep.subr.bf16.mxu1 %v5690_v0  ;;  %5255 = vmatpush3.bf16.msra.mxu0 %v6135_v42 }
0x1659   :  { %5256 = vmatprep.subr.bf16.mxu0 %v5690_v0 }
0x165b   :  { %5234 = vmatpush3.bf16.msra.mxu1 %v6073_v5 }
0x165c   :  { %5235 = vmatprep.subr.bf16.mxu1 %v5690_v0  ;;  %5258 = vmatpush3.bf16.msra.mxu0 %v6139_v47 }
0x165d   :  { %5259 = vmatprep.subr.bf16.mxu0 %v5690_v0 }
0x165f   :  { %5237 = vmatpush3.bf16.msra.mxu1 %v6077_v10 }
0x1660   :  { %5238 = vmatprep.subr.bf16.mxu1 %v5690_v0  ;;  %5261 = vmatpush3.bf16.msra.mxu0 %v6144_v52 }
0x1661   :  { %5262 = vmatprep.subr.bf16.mxu0 %v5690_v0 }
0x1663   :  { %5240 = vmatpush3.bf16.msra.mxu1 %v6082_v13 }
0x1664   :  { %5241 = vmatprep.subr.bf16.mxu1 %v5690_v0  ;;  %5264 = vmatpush3.bf16.msra.mxu0 %v6148_v57 }
0x1665   :  { %5265 = vmatprep.subr.bf16.mxu0 %v5690_v0 }
0x1667   :  { %5243 = vmatpush3.bf16.msra.mxu1 %v6090_v22 }
0x1668   :  { %5244 = vmatprep.subr.bf16.mxu1 %v5690_v0  ;;  %5267 = vmatpush3.bf16.msra.mxu0 %v6152_v62 }
0x1669   :  { %5268 = vmatprep.subr.bf16.mxu0 %v5690_v0 }
0x166b   :  { %5246 = vmatpush3.bf16.msra.mxu1 %v6095_v30 }
0x166c   :  { %5271 = vmatprep.subr.bf16.mxu1 %v5690_v0  ;;  %5270 = vmatpush3.bf16.msra.mxu0 %v6155_v4 }
0x166d   :  { %5295 = vmatprep.subr.bf16.mxu0 %v5690_v0 }
0x1721   :  { %v2101_v20 = vpop.f32.mrb[22].mxu1  ;;  %v2202_v24 = vpop.f32.mrb[30].mxu0 }
0x1722   :  { %v6474_v25 = vadd.f32 %v6205_v18, %v2101_v20  ;;  %v4299_v27 = vpop.f32.mrb[23].mxu1  ;;  %v4334_v33 = vpop.f32.mrb[31].mxu0 }
0x1724   :  { %2105 = vmax.xlane.f32.xlu0 %v6474_v25 }
0x17b1   :  { %v6477_v9 = vpop.xlane.xlu0 %2105 }
0x17b2   :  { %vm2117_vm13 = vcmp.eq.f32.partialorder %v6474_v25, %v6477_v9 }
0x17b3   :  { %v2118_v15 = vsel %vm2117_vm13, %v6211_v29, 128 }
0x17b4   :  { %v2120_v28 = vshra.s32 %v2118_v15, 16  ;;  %v2119_v38 = vand.u32 65535, %v2118_v15 }
0x17b6   :  { %v2122_v34 = vcvt.s32.f32 %v2120_v28  ;;  %v2121_v58 = vcvt.s32.f32 %v2119_v38 }
0x17b8   :  { %2123 = vmin.xlane.f32.xlu1 %v2122_v34 }
0x1845   :  { %v2124_v39 = vpop.xlane.xlu1 %2123 }
0x1846   :  { %vm2125_vm14 = vcmp.eq.f32.partialorder %v2122_v34, %v2124_v39  ;;  %v2130_v48 = vcvt.f32.s32 %v2124_v39 }
0x1847   :  { %v2126_v44 = vsel %vm2125_vm14, %v2121_v58, inf }
0x1848   :  { %2127 = vmin.xlane.f32.xlu0 %v2126_v44  ;;  %v2131_v53 = vshll.u32 %v2130_v48, 16 }
0x18d5   :  { %v2128_v51 = vpop.xlane.xlu0 %2127 }
0x18d6   :  { %v2129_v54 = vcvt.f32.s32 %v2128_v51 }
0x18d8   :  { %v2132_v55 = vadd.s32 %v2131_v53, %v2129_v54 }
0x18da   :  { %vm2133_vm15 = vcmp.eq.s32.totalorder %v6211_v29, %v2132_v55 }
0x18db   :  { %4368 = vmatmul.mubr.msk.f32.vlgmr.msra.gmra.mrb[24].mxu1 %vm2133_vm15, %v5693_v45 }
0x18dc   :  { %5273 = vmatpush3.bf16.msra.mxu1 %v6038_v37  ;;  %4437 = vmatprep.mubr.msk.f32.mxu1 %vm5691_vm0, %v5692_v1 }
0x18dd   :  { %5274 = vmatprep.subr.bf16.mxu1 %v5690_v0 }
0x18e0   :  { %5276 = vmatpush3.bf16.msra.mxu1 %v6042_v40 }
0x18e1   :  { %5277 = vmatprep.subr.bf16.mxu1 %v5690_v0 }
0x18e4   :  { %5279 = vmatpush3.bf16.msra.mxu1 %v6046_v43 }
0x18e5   :  { %5280 = vmatprep.subr.bf16.mxu1 %v5690_v0 }
0x18e8   :  { %5282 = vmatpush3.bf16.msra.mxu1 %v6050_v46 }
0x18e9   :  { %5283 = vmatprep.subr.bf16.mxu1 %v5690_v0 }
0x18ec   :  { %5285 = vmatpush3.bf16.msra.mxu1 %v6054_v49 }
0x18ed   :  { %5286 = vmatprep.subr.bf16.mxu1 %v5690_v0 }
0x18f0   :  { %5288 = vmatpush3.bf16.msra.mxu1 %v6084_v17 }
0x18f1   :  { %5289 = vmatprep.subr.bf16.mxu1 %v5690_v0 }
0x18f4   :  { %5291 = vmatpush3.bf16.msra.mxu1 %v6092_v26 }
0x18f5   :  { %5292 = vmatprep.subr.bf16.mxu1 %v5690_v0 }
0x18f8   :  { %5294 = vmatpush3.bf16.msra.mxu1 %v6099_v31 }
0x18f9   :  { %5319 = vmatprep.subr.bf16.mxu1 %v5690_v0 }
0x19ae   :  { %v2272_v59 = vpop.f32.mrb[24].mxu1 }
0x19af   :  { %v2273_v63 = vadd.f32 %v2272_v59, %v2202_v24  ;;  %v4369_v3 = vpop.f32.mrb[25].mxu1 }
0x19b1   :  { %v2276_v11 = vadd.f32 %v6163_v6, %v2273_v63 }
0x19b3   :  { %5455 = vtanh.f32 %v2276_v11 }
0x19bd   :  { %v5456_v12 = vpop.eup %5455 }
0x19be   :  { %4403 = vmatmul.mubr.f32.vlgmr.msra.gmra.mrb[32].mxu0 %v5456_v12  ;;  %4438 = vmatmul.mubr.f32.vlgmr.msra.gmra.mrb[26].mxu1 %v5456_v12 }
0x19bf   :  { %5297 = vmatpush3.bf16.msra.mxu0 %v6060_v56  ;;  %4472 = vmatprep.mubr.msk.f32.mxu0 %vm5691_vm0, %v5692_v1 }
0x19c0   :  { %5298 = vmatprep.subr.bf16.mxu0 %v5690_v0  ;;  %5321 = vmatpush3.bf16.msra.mxu1 %v6126_v35 }
0x19c1   :  { %5322 = vmatprep.subr.bf16.mxu1 %v5690_v0  ;;  %4507 = vmatprep.mubr.msk.f32.mxu1 %vm5691_vm0, %v5692_v1 }
0x19c3   :  { %5300 = vmatpush3.bf16.msra.mxu0 %v6063_v61 }
0x19c4   :  { %5301 = vmatprep.subr.bf16.mxu0 %v5690_v0  ;;  %5324 = vmatpush3.bf16.msra.mxu1 %v6129_v41 }
0x19c5   :  { %5325 = vmatprep.subr.bf16.mxu1 %v5690_v0 }
0x19c7   :  { %5303 = vmatpush3.bf16.msra.mxu0 %v6069_v2 }
0x19c8   :  { %5304 = vmatprep.subr.bf16.mxu0 %v5690_v0  ;;  %5327 = vmatpush3.bf16.msra.mxu1 %v6135_v42 }
0x19c9   :  { %5328 = vmatprep.subr.bf16.mxu1 %v5690_v0 }
0x19cb   :  { %5306 = vmatpush3.bf16.msra.mxu0 %v6073_v5 }
0x19cc   :  { %5307 = vmatprep.subr.bf16.mxu0 %v5690_v0  ;;  %5330 = vmatpush3.bf16.msra.mxu1 %v6139_v47 }
0x19cd   :  { %5331 = vmatprep.subr.bf16.mxu1 %v5690_v0 }
0x19cf   :  { %5309 = vmatpush3.bf16.msra.mxu0 %v6077_v10 }
0x19d0   :  { %5310 = vmatprep.subr.bf16.mxu0 %v5690_v0  ;;  %5333 = vmatpush3.bf16.msra.mxu1 %v6144_v52 }
0x19d1   :  { %5334 = vmatprep.subr.bf16.mxu1 %v5690_v0 }
0x19d3   :  { %5312 = vmatpush3.bf16.msra.mxu0 %v6082_v13 }
0x19d4   :  { %5313 = vmatprep.subr.bf16.mxu0 %v5690_v0  ;;  %5336 = vmatpush3.bf16.msra.mxu1 %v6148_v57 }
0x19d5   :  { %5337 = vmatprep.subr.bf16.mxu1 %v5690_v0 }
0x19d7   :  { %5315 = vmatpush3.bf16.msra.mxu0 %v6090_v22 }
0x19d8   :  { %5316 = vmatprep.subr.bf16.mxu0 %v5690_v0  ;;  %5339 = vmatpush3.bf16.msra.mxu1 %v6152_v62 }
0x19d9   :  { %5340 = vmatprep.subr.bf16.mxu1 %v5690_v0 }
0x19db   :  { %5318 = vmatpush3.bf16.msra.mxu0 %v6095_v30 }
0x19dc   :  { %5343 = vmatprep.subr.bf16.mxu0 %v5690_v0  ;;  %5342 = vmatpush3.bf16.msra.mxu1 %v6155_v4 }
0x19dd   :  { %5367 = vmatprep.subr.bf16.mxu1 %v5690_v0 }
0x1a91   :  { %v2344_v6 = vpop.f32.mrb[32].mxu0  ;;  %v2445_v14 = vpop.f32.mrb[26].mxu1 }
0x1a92   :  { %v6540_v16 = vadd.f32 %v6205_v18, %v2344_v6  ;;  %v4404_v19 = vpop.f32.mrb[33].mxu0  ;;  %v4439_v20 = vpop.f32.mrb[27].mxu1 }
0x1a94   :  { %2348 = vmax.xlane.f32.xlu1 %v6540_v16 }
0x1b21   :  { %v6543_v24 = vpop.xlane.xlu1 %2348 }
0x1b22   :  { %vm2360_vm1 = vcmp.eq.f32.partialorder %v6540_v16, %v6543_v24 }
0x1b23   :  { %v2361_v27 = vsel %vm2360_vm1, %v6211_v29, 128 }
0x1b24   :  { %v2363_v33 = vshra.s32 %v2361_v27, 16  ;;  %v2362_v28 = vand.u32 65535, %v2361_v27 }
0x1b26   :  { %v2365_v15 = vcvt.s32.f32 %v2363_v33  ;;  %v2364_v38 = vcvt.s32.f32 %v2362_v28 }
0x1b28   :  { %2366 = vmin.xlane.f32.xlu0 %v2365_v15 }
0x1bb5   :  { %v2367_v34 = vpop.xlane.xlu0 %2366 }
0x1bb6   :  { %vm2368_vm2 = vcmp.eq.f32.partialorder %v2365_v15, %v2367_v34  ;;  %v2373_v58 = vcvt.f32.s32 %v2367_v34 }
0x1bb7   :  { %v2369_v39 = vsel %vm2368_vm2, %v2364_v38, inf }
0x1bb8   :  { %2370 = vmin.xlane.f32.xlu1 %v2369_v39  ;;  %v2374_v48 = vshll.u32 %v2373_v58, 16 }
0x1c45   :  { %v2371_v44 = vpop.xlane.xlu1 %2370 }
0x1c46   :  { %v2372_v51 = vcvt.f32.s32 %v2371_v44 }
0x1c48   :  { %v2375_v53 = vadd.s32 %v2374_v48, %v2372_v51 }
0x1c4a   :  { %vm2376_vm3 = vcmp.eq.s32.totalorder %v6211_v29, %v2375_v53  ;;  %v1378_v53 = vsub.f32 %v6276_v60, %v6279_v7 }
0x1c4b   :  { %4473 = vmatmul.mubr.msk.f32.vlgmr.msra.gmra.mrb[34].mxu0 %vm2376_vm3, %v5693_v45 }
0x1c4c   :  { %5345 = vmatpush3.bf16.msra.mxu0 %v6038_v37  ;;  %4542 = vmatprep.mubr.msk.f32.mxu0 %vm5691_vm0, %v5692_v1 }
0x1c4d   :  { %5346 = vmatprep.subr.bf16.mxu0 %v5690_v0 }
0x1c50   :  { %5348 = vmatpush3.bf16.msra.mxu0 %v6042_v40 }
0x1c51   :  { %5349 = vmatprep.subr.bf16.mxu0 %v5690_v0 }
0x1c54   :  { %5351 = vmatpush3.bf16.msra.mxu0 %v6046_v43 }
0x1c55   :  { %5352 = vmatprep.subr.bf16.mxu0 %v5690_v0 }
0x1c58   :  { %5354 = vmatpush3.bf16.msra.mxu0 %v6050_v46  ;;  %v6571_v46 = vld [vmem:[%s6653_s7] ss:$0 sm:$0xff] }
0x1c59   :  { %5355 = vmatprep.subr.bf16.mxu0 %v5690_v0 }
0x1c5c   :  { %5357 = vmatpush3.bf16.msra.mxu0 %v6054_v49 }
0x1c5d   :  { %5358 = vmatprep.subr.bf16.mxu0 %v5690_v0 }
0x1c60   :  { %5360 = vmatpush3.bf16.msra.mxu0 %v6084_v17 }
0x1c61   :  { %5361 = vmatprep.subr.bf16.mxu0 %v5690_v0 }
0x1c64   :  { %5363 = vmatpush3.bf16.msra.mxu0 %v6092_v26 }
0x1c65   :  { %5364 = vmatprep.subr.bf16.mxu0 %v5690_v0 }
0x1c68   :  { %5366 = vmatpush3.bf16.msra.mxu0 %v6099_v31  ;;  %v1621_v31 = vsub.f32 %v6342_v8, %v6345_v50 }
0x1c69   :  { %5391 = vmatprep.subr.bf16.mxu0 %v5690_v0 }
0x1d1e   :  { %v2515_v37 = vpop.f32.mrb[34].mxu0 }
0x1d1f   :  { %v2516_v40 = vadd.f32 %v2515_v37, %v2445_v14  ;;  %v4474_v43 = vpop.f32.mrb[35].mxu0  ;;  %v1379_v37 = vmul.f32 1.442695, %v1378_v53 }
0x1d21   :  { %v2519_v49 = vadd.f32 %v6571_v46, %v2516_v40  ;;  %v1864_v40 = vsub.f32 %v6408_v21, %v6411_v36 }
0x1d23   :  { %5457 = vtanh.f32 %v2519_v49  ;;  %v1865_v43 = vmul.f32 1.442695, %v1864_v40  ;;  %v2350_v49 = vsub.f32 %v6540_v16, %v6543_v24 }
0x1d2d   :  { %v5458_v17 = vpop.eup %5457 }
0x1d2e   :  { %4508 = vmatmul.mubr.f32.vlgmr.msra.gmra.mrb[28].mxu1 %v5458_v17  ;;  %4543 = vmatmul.mubr.f32.vlgmr.msra.gmra.mrb[36].mxu0 %v5458_v17  ;;  %v2351_v17 = vmul.f32 1.442695, %v2350_v49 }
0x1d2f   :  { %5369 = vmatpush3.bf16.msra.mxu1 %v6060_v56  ;;  %4577 = vmatprep.mubr.msk.f32.mxu1 %vm5691_vm0, %v5692_v1 }
0x1d30   :  { %5370 = vmatprep.subr.bf16.mxu1 %v5690_v0  ;;  %5393 = vmatpush3.bf16.msra.mxu0 %v6126_v35  ;;  %v1622_v35 = vmul.f32 1.442695, %v1621_v31 }
0x1d31   :  { %5394 = vmatprep.subr.bf16.mxu0 %v5690_v0  ;;  %4612 = vmatprep.mubr.msk.f32.mxu0 %vm5691_vm0, %v5692_v1 }
0x1d33   :  { %5372 = vmatpush3.bf16.msra.mxu1 %v6063_v61 }
0x1d34   :  { %5373 = vmatprep.subr.bf16.mxu1 %v5690_v0  ;;  %5396 = vmatpush3.bf16.msra.mxu0 %v6129_v41  ;;  %v2107_v41 = vsub.f32 %v6474_v25, %v6477_v9 }
0x1d35   :  { %5397 = vmatprep.subr.bf16.mxu0 %v5690_v0 }
0x1d37   :  { %5375 = vmatpush3.bf16.msra.mxu1 %v6069_v2 }
0x1d38   :  { %5376 = vmatprep.subr.bf16.mxu1 %v5690_v0  ;;  %5399 = vmatpush3.bf16.msra.mxu0 %v6135_v42 }
0x1d39   :  { %5400 = vmatprep.subr.bf16.mxu0 %v5690_v0 }
0x1d3b   :  { %5378 = vmatpush3.bf16.msra.mxu1 %v6073_v5 }
0x1d3c   :  { %5379 = vmatprep.subr.bf16.mxu1 %v5690_v0  ;;  %5402 = vmatpush3.bf16.msra.mxu0 %v6139_v47  ;;  %v2108_v47 = vmul.f32 1.442695, %v2107_v41 }
0x1d3d   :  { %5403 = vmatprep.subr.bf16.mxu0 %v5690_v0 }
0x1d3f   :  { %5381 = vmatpush3.bf16.msra.mxu1 %v6077_v10 }
0x1d40   :  { %5382 = vmatprep.subr.bf16.mxu1 %v5690_v0  ;;  %5405 = vmatpush3.bf16.msra.mxu0 %v6144_v52 }
0x1d41   :  { %5406 = vmatprep.subr.bf16.mxu0 %v5690_v0 }
0x1d43   :  { %5384 = vmatpush3.bf16.msra.mxu1 %v6082_v13 }
0x1d44   :  { %5385 = vmatprep.subr.bf16.mxu1 %v5690_v0  ;;  %5408 = vmatpush3.bf16.msra.mxu0 %v6148_v57 }
0x1d45   :  { %5409 = vmatprep.subr.bf16.mxu0 %v5690_v0 }
0x1d47   :  { %5387 = vmatpush3.bf16.msra.mxu1 %v6090_v22 }
0x1d48   :  { %5388 = vmatprep.subr.bf16.mxu1 %v5690_v0  ;;  %5411 = vmatpush3.bf16.msra.mxu0 %v6152_v62 }
0x1d49   :  { %5412 = vmatprep.subr.bf16.mxu0 %v5690_v0  ;;  %v1136_v0 = vsub.f32 %v6208_v23, %v6213_v32 }
0x1d4b   :  { %5390 = vmatpush3.bf16.msra.mxu1 %v6095_v30  ;;  %v1137_v30 = vmul.f32 1.442695, %v1136_v0 }
0x1d4c   :  { %5414 = vmatpush3.bf16.msra.mxu0 %v6155_v4 }
0x1d4d   :  { %5459 = vpow2.f32 %v1137_v30 }
0x1d4e   :  { %5461 = vpow2.f32 %v1622_v35 }
0x1d4f   :  { %5463 = vpow2.f32 %v2108_v47 }
0x1d57   :  { %v5460_v23 = vpop.eup %5459 }
0x1d58   :  { %v5462_v32 = vpop.eup %5461 }
0x1d59   :  { %v5464_v8 = vpop.eup %5463 }
0x1e01   :  { %v2587_v1 = vpop.f32.mrb[28].mxu1  ;;  %v6608_v56 = vpop.f32.mrb[36].mxu0 }
0x1e02   :  { %v2588_v61 = vadd.f32 %v6205_v18, %v2587_v1  ;;  %v4509_v2 = vpop.f32.mrb[29].mxu1  ;;  %v4544_v5 = vpop.f32.mrb[37].mxu0 }
0x1e04   :  { %2591 = vmax.xlane.f32.xlu0 %v2588_v61 }
0x1e91   :  { %v2592_v10 = vpop.xlane.xlu0 %2591 }
0x1e92   :  { %vm2603_vm0 = vcmp.eq.f32.partialorder %v2588_v61, %v2592_v10  ;;  %v2593_v52 = vsub.f32 %v2588_v61, %v2592_v10 }
0x1e93   :  { %v2604_v13 = vsel %vm2603_vm0, %v6211_v29, 128 }
0x1e94   :  { %v2606_v22 = vshra.s32 %v2604_v13, 16  ;;  %v2605_v42 = vand.u32 65535, %v2604_v13  ;;  %v2594_v18 = vmul.f32 1.442695, %v2593_v52 }
0x1e96   :  { %v2608_v26 = vcvt.s32.f32 %v2606_v22  ;;  %v2607_v62 = vcvt.s32.f32 %v2605_v42  ;;  %5465 = vpow2.f32 %v2594_v18 }
0x1e98   :  { %2609 = vmin.xlane.f32.xlu1 %v2608_v26 }
0x1ea0   :  { %v5466_v50 = vpop.eup %5465 }
0x1f25   :  { %v2610_v57 = vpop.xlane.xlu1 %2609 }
0x1f26   :  { %vm2611_vm4 = vcmp.eq.f32.partialorder %v2608_v26, %v2610_v57  ;;  %v2616_v25 = vcvt.f32.s32 %v2610_v57 }
0x1f27   :  { %v2612_v4 = vsel %vm2611_vm4, %v2607_v62, inf }
0x1f28   :  { %2613 = vmin.xlane.f32.xlu0 %v2612_v4  ;;  %v2617_v54 = vshll.u32 %v2616_v25, 16 }
0x1f2c   :  { %1139 = vadd.xlane.f32.xlu0 %v5460_v23 }
0x1f30   :  { %1624 = vadd.xlane.f32.xlu0 %v5462_v32 }
0x1f34   :  { %2110 = vadd.xlane.f32.xlu0 %v5464_v8 }
0x1f38   :  { %2596 = vadd.xlane.f32.xlu0 %v5466_v50 }
0x1fb5   :  { %v2614_v9 = vpop.xlane.xlu0 %2613 }
0x1fb6   :  { %v2615_v55 = vcvt.f32.s32 %v2614_v9 }
0x1fb8   :  { %v2618_v59 = vadd.s32 %v2617_v54, %v2615_v55 }
0x1fb9   :  { %v1140_v63 = vpop.xlane.xlu0 %1139 }
0x1fba   :  { %vm2619_vm5 = vcmp.eq.s32.totalorder %v6211_v29, %v2618_v59  ;;  %5467 = vlog2.f32 %v1140_v63 }
0x1fbb   :  { %4578 = vmatmul.mubr.msk.f32.vlgmr.msra.gmra.mrb[30].mxu1 %vm2619_vm5, %v5693_v45 }
0x1fbd   :  { %v1625_v3 = vpop.xlane.xlu0 %1624 }
0x1fbe   :  { %5469 = vlog2.f32 %v1625_v3 }
0x1fc1   :  { %v2111_v11 = vpop.xlane.xlu0 %2110 }
0x1fc2   :  { %5471 = vlog2.f32 %v2111_v11 }
0x1fc4   :  { %v5468_v12 = vpop.eup %5467 }
0x1fc5   :  { %v1142_v6 = vmul.f32 0.6931472, %v5468_v12  ;;  %v2597_v14 = vpop.xlane.xlu0 %2596 }
0x1fc6   :  { %5473 = vlog2.f32 %v2597_v14 }
0x1fc7   :  { %v1143_v19 = vsub.f32 %v1136_v0, %v1142_v6 }
0x1fc8   :  { %v5470_v20 = vpop.eup %5469 }
0x1fc9   :  { %1144 = vst [vmem:[#allocation14] sm:$0xff] %v1143_v19  ;;  %v1627_v27 = vmul.f32 0.6931472, %v5470_v20 }
0x1fcb   :  { %v1628_v33 = vsub.f32 %v1621_v31, %v1627_v27 }
0x1fcc   :  { %v5472_v15 = vpop.eup %5471 }
0x1fcd   :  { %1630 = vst [vmem:[#allocation14 + $0x10] sm:$0xff] %v1628_v33  ;;  %v2113_v28 = vmul.f32 0.6931472, %v5472_v15 }
0x1fcf   :  { %v2114_v29 = vsub.f32 %v2107_v41, %v2113_v28 }
0x1fd0   :  { %v5474_v34 = vpop.eup %5473 }
0x1fd1   :  { %2116 = vst [vmem:[#allocation14 + $0x20] sm:$0xff] %v2114_v29  ;;  %v2599_v45 = vmul.f32 0.6931472, %v5474_v34 }
0x1fd3   :  { %v2600_v38 = vsub.f32 %v2593_v52, %v2599_v45 }
0x1fd5   :  { %2602 = vst [vmem:[#allocation14 + $0x30] sm:$0xff] %v2600_v38 }
0x208e   :  { %v2758_v39 = vpop.f32.mrb[30].mxu1 }
0x208f   :  { %v2759_v58 = vadd.f32 %v2758_v39, %v6608_v56  ;;  %v4579_v44 = vpop.f32.mrb[31].mxu1 }
0x2091   :  { %v2762_v48 = vadd.f32 %v6571_v46, %v2759_v58  ;;  %v5494_v46 = vld [vmem:[%s6655_s9] ss:$0 sm:$0xff]  ;;  %s5694_s9 = smov [#allocation14]  }
0x2092   :  { %s2851_s21 = sshll.u32 %s5694_s9, 4  ;;  %s2852_s21 = int_to_ptr.vmem [resolvable:$true] %s2851_s21 }
0x2093   :  { %5475 = vtanh.f32 %v2762_v48  ;;  %s5649_s6 = scalar_lea.vmem %s2852_s21, 1024  ;;  %p5654_p1 = scmp.lt.s32.totalorder %s2852_s21, %s2852_s21 }
0x2094   :  { %5477 = vpow2.f32 %v1379_v37  ;;  %p5650_p0 = scmp.ne.s32.totalorder %s2852_s21, %s5649_s6  ;;  %p5655_p2 = scmp.lt.s32.totalorder %s5649_s6, %s5649_s6 }
0x2095   :  { %5479 = vpow2.f32 %v1865_v43 }
0x2096   :  { %5481 = vpow2.f32 %v2351_v17  ;;  %p5656_p3 = por %p5655_p2, %p5654_p1 }
0x2098   :  { %p5657_p4 = pnand %p5656_p3, %p5650_p0 }
0x209d   :  { %v5476_v51 = vpop.eup %5475 }
0x209e   :  { %4613 = vmatmul.mubr.f32.vlgmr.msra.gmra.mrb[38].mxu0 %v5476_v51  ;;  %v5478_v60 = vpop.eup %5477 }
0x209f   :  { %v5480_v7 = vpop.eup %5479 }
0x20a0   :  { %v5482_v21 = vpop.eup %5481 }
0x2171   :  { %v2830_v1 = vpop.f32.mrb[38].mxu0 }
0x2172   :  { %v2831_v56 = vadd.f32 %v5494_v46, %v2830_v1  ;;  %v4614_v61 = vpop.f32.mrb[39].mxu0 }
0x2174   :  { %2834 = vmax.xlane.f32.xlu1 %v2831_v56 }
0x2178   :  { %1381 = vadd.xlane.f32.xlu1 %v5478_v60 }
0x217c   :  { %1867 = vadd.xlane.f32.xlu1 %v5480_v7 }
0x2180   :  { %2353 = vadd.xlane.f32.xlu1 %v5482_v21 }
0x2201   :  { %v2835_v36 = vpop.xlane.xlu1 %2834 }
0x2202   :  { %v2836_v2 = vsub.f32 %v2831_v56, %v2835_v36 }
0x2204   :  { %v2837_v16 = vmul.f32 1.442695, %v2836_v2 }
0x2205   :  { %v1382_v24 = vpop.xlane.xlu1 %1381 }
0x2206   :  { %5483 = vpow2.f32 %v2837_v16 }
0x2207   :  { %5485 = vlog2.f32 %v1382_v24 }
0x2209   :  { %v1868_v5 = vpop.xlane.xlu1 %1867 }
0x220a   :  { %5487 = vlog2.f32 %v1868_v5 }
0x220d   :  { %v2354_v10 = vpop.xlane.xlu1 %2353 }
0x220e   :  { %5489 = vlog2.f32 %v2354_v10 }
0x2210   :  { %v5484_v13 = vpop.eup %5483 }
0x2211   :  { %v5486_v22 = vpop.eup %5485  ;;  %2839 = vadd.xlane.f32.xlu1 %v5484_v13 }
0x2212   :  { %v1384_v26 = vmul.f32 0.6931472, %v5486_v22 }
0x2214   :  { %v5488_v0 = vpop.eup %5487  ;;  %v1385_v30 = vsub.f32 %v1378_v53, %v1384_v26 }
0x2215   :  { %v1870_v31 = vmul.f32 0.6931472, %v5488_v0 }
0x2216   :  { %1387 = vst [vmem:[#allocation14 + $0x8] sm:$0xff] %v1385_v30 }
0x2217   :  { %v1871_v35 = vsub.f32 %v1864_v40, %v1870_v31 }
0x2218   :  { %v5490_v41 = vpop.eup %5489 }
0x2219   :  { %1873 = vst [vmem:[#allocation14 + $0x18] sm:$0xff] %v1871_v35  ;;  %v2356_v42 = vmul.f32 0.6931472, %v5490_v41 }
0x221b   :  { %v2357_v47 = vsub.f32 %v2350_v49, %v2356_v42 }
0x221d   :  { %2359 = vst [vmem:[#allocation14 + $0x28] sm:$0xff] %v2357_v47 }
0x229e   :  { %v2840_v52 = vpop.xlane.xlu1 %2839 }
0x229f   :  { %5491 = vlog2.f32 %v2840_v52 }
0x22a9   :  { %v5492_v57 = vpop.eup %5491 }
0x22aa   :  { %v2842_v62 = vmul.f32 0.6931472, %v5492_v57 }
0x22ac   :  { %v2843_v4 = vsub.f32 %v2836_v2, %v2842_v62 }
0x22ae   :  { %2845 = vst [vmem:[#allocation14 + $0x38] sm:$0xff] %v2843_v4 }
0x22af   :  { %5660 = shalt.err (!%p5657_p4)
}
0x22b0   :  { %s5661_s2 = scalar_lea.hbm %s6656_s10, 1024 }
0x22b1   :  { %p5662_p5 = scmp.ne.s32.totalorder %s6656_s10, %s5661_s2  ;;  %p5665_p6 = scmp.lt.u32.totalorder %s5661_s2, %s6656_s10 }
0x22b3   :  { %p5667_p7 = pnand %p5665_p6, %p5662_p5 }
0x22b5   :  { %5670 = shalt.err (!%p5667_p7)
}
0x22b6   :  { %2857 = dma.vmem_to_hbm [thread:$0]  %s2852_s21, 1024, %s6656_s10, [#allocation4], %s5684_s14, %s5684_s14, %s5685_s17  }
0x22b7   :  { %5679 = dma.done.wait [#allocation4], 1024  }
0x22b8   :  { %5680 = vsyncadd [#allocation4], 4294966272 }
0x22b9   :  { %2861 = vsyncpa [#allocation3], 1 }
0x22ba   :  { %2862 = vsyncpa [#allocation6], 1 }
0x22bb   :  { %2863 = vsyncpa [#allocation9], 1 }
0x22bc   :  { %2864 = vsyncpa [#allocation12], 1 }
0x22bd   :  { %2865 = vsyncpa [#allocation4], 1 }

</bundles_post_ra>
